<compile_context>
chip_gen: v5e
topology: v5e:2x2
jax: 0.10.0
libtpu: 0.0.40
codegen_flags: <defaults>
</compile_context>

<pallas_src>
import functools

import jax
import jax.numpy as jnp
from jax import lax
from jax.experimental import pallas as pl
from jax.experimental.pallas import tpu as pltpu

BN_EPS = 1e-5
LANE = 128

# Per-layer behavior, in forward order: (apply_bn, apply_relu)
#   enc_1..enc_3 : Linear -> BN -> ReLU
#   z1..z3       : Linear -> BN
#   dec_1..dec_3 : Linear -> BN -> ReLU
#   x_bar        : Linear -> ReLU
LAYER_CFG = (
    (True, True), (True, True), (True, True),
    (True, False), (True, False), (True, False),
    (True, True), (True, True), (True, True),
    (False, True),
)
Z3_LAYER_IDX = 5  # output of the "z3" layer is the second module output


def _round_up(n, m):
    return ((n + m - 1) // m) * m


def _params_per_layer(apply_bn):
    # BN layers:   (w, gamma, beta)   -- Linear bias folded away by BN.
    # non-BN layer: (w, bias)
    return 3 if apply_bn else 2


# ----------------------------------------------------------------------------
# Fused kernel: the entire forward pass in one VMEM-resident pass.
# ----------------------------------------------------------------------------
def _ae_fused_kernel(*refs, layer_cfg, z3_idx):
    """refs = (x, <per-layer params...>, xbar_out, z3_out)."""
    n_params = sum(_params_per_layer(bn) for bn, _ in layer_cfg)
    x_ref = refs[0]
    param_refs = refs[1:1 + n_params]
    xbar_ref = refs[1 + n_params]
    z3_ref = refs[2 + n_params]

    h = x_ref[...]                                      # (N, d0_pad) f32
    cursor = 0
    for li, (apply_bn, apply_relu) in enumerate(layer_cfg):
        w = param_refs[cursor][...]                     # (din_pad, dout_pad)
        cursor += 1
        # MXU matmul with f32 accumulation.
        y = jnp.dot(h, w, preferred_element_type=jnp.float32)
        if apply_bn:
            g = param_refs[cursor][...]                 # (1, dout_pad)
            bt = param_refs[cursor + 1][...]            # (1, dout_pad)
            cursor += 2
            # BatchNorm1d training mode: biased batch stats, fused affine.
            # (Linear bias cancels under mean subtraction -> never added.)
            mean = jnp.mean(y, axis=0, keepdims=True)
            diff = y - mean
            var = jnp.mean(diff * diff, axis=0, keepdims=True)
            scale = g * lax.rsqrt(var + BN_EPS)         # (1, dout_pad)
            y = diff * scale + bt
        else:
            b = param_refs[cursor][...]                 # (1, dout_pad)
            cursor += 1
            y = y + b
        if apply_relu:
            y = jnp.maximum(y, 0.0)
        if li == z3_idx:
            z3_ref[...] = y.astype(z3_ref.dtype)
        h = y
    xbar_ref[...] = h.astype(xbar_ref.dtype)


# ----------------------------------------------------------------------------
# Parameter construction (PyTorch-style init), pre-transposed + lane-padded.
# ----------------------------------------------------------------------------
def make_ae_params(key, layer_dims):
    """layer_dims: list of (din, dout) for the 10 layers, in forward order.

    Returns:
      padded_flat: tuple of per-layer kernel params:
                   BN layer    -> w (din_pad, dout_pad), gamma (1, dout_pad),
                                  beta (1, dout_pad)
                   non-BN layer -> w (din_pad, dout_pad), bias (1, dout_pad)
      out_pads:    list of padded output widths per layer.
      raw:         list of (w (out,in), b (out,), gamma (out,), beta (out,))
                   for the pure-JAX reference.
    """
    keys = jax.random.split(key, len(layer_dims))
    padded = []
    out_pads = []
    raw = []
    for k, (din, dout), (apply_bn, _) in zip(keys, layer_dims, LAYER_CFG):
        kw, kb = jax.random.split(k)
        bound = 1.0 / float(din) ** 0.5
        w = jax.random.uniform(kw, (dout, din), jnp.float32, -bound, bound)
        b = jax.random.uniform(kb, (dout,), jnp.float32, -bound, bound)
        g = jnp.ones((dout,), jnp.float32)
        bt = jnp.zeros((dout,), jnp.float32)
        raw.append((w, b, g, bt))

        din_p = _round_up(din, LANE)
        dout_p = _round_up(dout, LANE)
        out_pads.append(dout_p)
        w_p = jnp.zeros((din_p, dout_p), jnp.float32).at[:din, :dout].set(w.T)
        padded.append(w_p)
        if apply_bn:
            g_p = jnp.zeros((1, dout_p), jnp.float32).at[0, :dout].set(g)
            bt_p = jnp.zeros((1, dout_p), jnp.float32).at[0, :dout].set(bt)
            padded.extend([g_p, bt_p])
        else:
            b_p = jnp.zeros((1, dout_p), jnp.float32).at[0, :dout].set(b)
            padded.append(b_p)
    return tuple(padded), out_pads, raw


# ----------------------------------------------------------------------------
# Forward pass: one pallas_call for the whole network.
# ----------------------------------------------------------------------------
def ae_forward(padded_params, x, *, out_pads, n_input, n_z3):
    n = x.shape[0]
    din_pad = padded_params[0].shape[0]                 # first weight rows
    dz3_pad = out_pads[Z3_LAYER_IDX]
    dlast_pad = out_pads[-1]

    x_pad = jnp.zeros((n, din_pad), jnp.float32).at[:, :x.shape[1]].set(
        x.astype(jnp.float32))

    kernel = functools.partial(_ae_fused_kernel,
                               layer_cfg=LAYER_CFG, z3_idx=Z3_LAYER_IDX)
    vmem = pltpu.MemorySpace.VMEM
    n_inputs = 1 + len(padded_params)

    xbar_pad, z3_pad = pl.pallas_call(
        kernel,
        out_shape=(jax.ShapeDtypeStruct((n, dlast_pad), jnp.float32),
                   jax.ShapeDtypeStruct((n, dz3_pad), jnp.float32)),
        in_specs=[pl.BlockSpec(memory_space=vmem)] * n_inputs,
        out_specs=(pl.BlockSpec(memory_space=vmem),
                   pl.BlockSpec(memory_space=vmem)),
    )(x_pad, *padded_params)

    return xbar_pad[:, :n_input], z3_pad[:, :n_z3]


# ----------------------------------------------------------------------------
# Pure-JAX reference (unpadded, full PyTorch formula incl. biases).
# ----------------------------------------------------------------------------
def ae_forward_ref(raw_params, x):
    h = x
    z3 = None
    for li, ((w, b, g, bt), (apply_bn, apply_relu)) in enumerate(
            zip(raw_params, LAYER_CFG)):
        y = h @ w.T + b
        if apply_bn:
            mean = y.mean(axis=0, keepdims=True)
            var = ((y - mean) ** 2).mean(axis=0, keepdims=True)
            y = g * (y - mean) / jnp.sqrt(var + BN_EPS) + bt
        if apply_relu:
            y = jnp.maximum(y, 0.0)
        if li == Z3_LAYER_IDX:
            z3 = y
        h = y
    return h, z3


if __name__ == "__main__":
    # Small, deterministic config (matches the module's constructor args).
    n_input = 16
    n_enc_1, n_enc_2, n_enc_3 = 32, 32, 64
    n_z1, n_z2, n_z3 = 16, 16, 8
    n_dec_1, n_dec_2, n_dec_3 = 64, 32, 32
    batch = 8

    layer_dims = [
        (n_input, n_enc_1), (n_enc_1, n_enc_2), (n_enc_2, n_enc_3),
        (n_enc_3, n_z1), (n_z1, n_z2), (n_z2, n_z3),
        (n_z3, n_dec_1), (n_dec_1, n_dec_2), (n_dec_2, n_dec_3),
        (n_dec_3, n_input),
    ]

    key = jax.random.PRNGKey(0)
    k_params, k_x = jax.random.split(key)
    padded_params, out_pads, raw_params = make_ae_params(k_params, layer_dims)
    x = jax.random.normal(k_x, (batch, n_input), jnp.float32)

    fwd = jax.jit(functools.partial(ae_forward, out_pads=out_pads,
                                    n_input=n_input, n_z3=n_z3))
    x_bar, z3 = fwd(padded_params, x)
    jax.block_until_ready((x_bar, z3))

    assert x_bar.shape == (batch, n_input)
    assert z3.shape == (batch, n_z3)

    # Numerical check against the pure-JAX reference (loose tol: MXU default
    # f32 matmul precision differs slightly from XLA's).
    x_bar_ref, z3_ref = ae_forward_ref(raw_params, x)
    assert jnp.allclose(x_bar, x_bar_ref, atol=5e-2, rtol=5e-2)
    assert jnp.allclose(z3, z3_ref, atol=5e-2, rtol=5e-2)

    print("KERNEL_OK")
</pallas_src>

<mosaic_0001>
module attributes {stable_mosaic.version = 11 : i64} {
  func.func @_ae_fused_kernel(%arg0: memref<8x128xf32, #tpu.memory_space<vmem>>, %arg1: memref<128x128xf32, #tpu.memory_space<vmem>>, %arg2: memref<1x128xf32, #tpu.memory_space<vmem>>, %arg3: memref<1x128xf32, #tpu.memory_space<vmem>>, %arg4: memref<128x128xf32, #tpu.memory_space<vmem>>, %arg5: memref<1x128xf32, #tpu.memory_space<vmem>>, %arg6: memref<1x128xf32, #tpu.memory_space<vmem>>, %arg7: memref<128x128xf32, #tpu.memory_space<vmem>>, %arg8: memref<1x128xf32, #tpu.memory_space<vmem>>, %arg9: memref<1x128xf32, #tpu.memory_space<vmem>>, %arg10: memref<128x128xf32, #tpu.memory_space<vmem>>, %arg11: memref<1x128xf32, #tpu.memory_space<vmem>>, %arg12: memref<1x128xf32, #tpu.memory_space<vmem>>, %arg13: memref<128x128xf32, #tpu.memory_space<vmem>>, %arg14: memref<1x128xf32, #tpu.memory_space<vmem>>, %arg15: memref<1x128xf32, #tpu.memory_space<vmem>>, %arg16: memref<128x128xf32, #tpu.memory_space<vmem>>, %arg17: memref<1x128xf32, #tpu.memory_space<vmem>>, %arg18: memref<1x128xf32, #tpu.memory_space<vmem>>, %arg19: memref<128x128xf32, #tpu.memory_space<vmem>>, %arg20: memref<1x128xf32, #tpu.memory_space<vmem>>, %arg21: memref<1x128xf32, #tpu.memory_space<vmem>>, %arg22: memref<128x128xf32, #tpu.memory_space<vmem>>, %arg23: memref<1x128xf32, #tpu.memory_space<vmem>>, %arg24: memref<1x128xf32, #tpu.memory_space<vmem>>, %arg25: memref<128x128xf32, #tpu.memory_space<vmem>>, %arg26: memref<1x128xf32, #tpu.memory_space<vmem>>, %arg27: memref<1x128xf32, #tpu.memory_space<vmem>>, %arg28: memref<128x128xf32, #tpu.memory_space<vmem>>, %arg29: memref<1x128xf32, #tpu.memory_space<vmem>>, %arg30: memref<8x128xf32, #tpu.memory_space<vmem>>, %arg31: memref<8x128xf32, #tpu.memory_space<vmem>>) attributes {dimension_semantics = [], scalar_prefetch = 0 : i64, scratch_operands = 0 : i64, tpu.core_type = #tpu.core_type<tc>} {
    %c0 = arith.constant 0 : index
    %c0_0 = arith.constant 0 : index
    %0 = vector.load %arg0[%c0, %c0_0] : memref<8x128xf32, #tpu.memory_space<vmem>>, vector<8x128xf32>
    %c0_1 = arith.constant 0 : index
    %c0_2 = arith.constant 0 : index
    %1 = vector.load %arg1[%c0_1, %c0_2] : memref<128x128xf32, #tpu.memory_space<vmem>>, vector<128x128xf32>
    %cst = arith.constant dense<0.000000e+00> : vector<8x128xf32>
    %2 = tpu.matmul %0, %1, %cst {dimension_numbers = #tpu.dot_dimension_numbers<[1], [0], [0], [1], [0, 0, 1, 1], [], []>} : vector<8x128xf32>, vector<128x128xf32>, vector<8x128xf32> -> vector<8x128xf32>
    %c0_3 = arith.constant 0 : index
    %c0_4 = arith.constant 0 : index
    %3 = vector.load %arg2[%c0_3, %c0_4] : memref<1x128xf32, #tpu.memory_space<vmem>>, vector<1x128xf32>
    %c0_5 = arith.constant 0 : index
    %c0_6 = arith.constant 0 : index
    %4 = vector.load %arg3[%c0_5, %c0_6] : memref<1x128xf32, #tpu.memory_space<vmem>>, vector<1x128xf32>
    %cst_7 = arith.constant dense<0.000000e+00> : vector<128xf32>
    %5 = vector.multi_reduction <add>, %2, %cst_7 [0] : vector<8x128xf32> to vector<128xf32>
    %6 = vector.shape_cast %5 : vector<128xf32> to vector<1x128xf32>
    %cst_8 = arith.constant 8.000000e+00 : f32
    %7 = vector.broadcast %cst_8 : f32 to vector<1x128xf32>
    %8 = arith.divf %6, %7 : vector<1x128xf32>
    %9 = vector.broadcast %8 : vector<1x128xf32> to vector<8x128xf32>
    %10 = arith.subf %2, %9 : vector<8x128xf32>
    %11 = arith.mulf %10, %10 : vector<8x128xf32>
    %cst_9 = arith.constant dense<0.000000e+00> : vector<128xf32>
    %12 = vector.multi_reduction <add>, %11, %cst_9 [0] : vector<8x128xf32> to vector<128xf32>
    %13 = vector.shape_cast %12 : vector<128xf32> to vector<1x128xf32>
    %cst_10 = arith.constant 8.000000e+00 : f32
    %14 = vector.broadcast %cst_10 : f32 to vector<1x128xf32>
    %15 = arith.divf %13, %14 : vector<1x128xf32>
    %cst_11 = arith.constant 9.99999974E-6 : f32
    %16 = vector.broadcast %cst_11 : f32 to vector<1x128xf32>
    %17 = arith.addf %15, %16 : vector<1x128xf32>
    %18 = math.rsqrt %17 : vector<1x128xf32>
    %19 = arith.mulf %3, %18 : vector<1x128xf32>
    %20 = vector.broadcast %19 : vector<1x128xf32> to vector<8x128xf32>
    %21 = arith.mulf %10, %20 : vector<8x128xf32>
    %22 = vector.broadcast %4 : vector<1x128xf32> to vector<8x128xf32>
    %23 = arith.addf %21, %22 : vector<8x128xf32>
    %cst_12 = arith.constant 0.000000e+00 : f32
    %24 = vector.broadcast %cst_12 : f32 to vector<8x128xf32>
    %25 = arith.maximumf %23, %24 : vector<8x128xf32>
    %c0_13 = arith.constant 0 : index
    %c0_14 = arith.constant 0 : index
    %26 = vector.load %arg4[%c0_13, %c0_14] : memref<128x128xf32, #tpu.memory_space<vmem>>, vector<128x128xf32>
    %cst_15 = arith.constant dense<0.000000e+00> : vector<8x128xf32>
    %27 = tpu.matmul %25, %26, %cst_15 {dimension_numbers = #tpu.dot_dimension_numbers<[1], [0], [0], [1], [0, 0, 1, 1], [], []>} : vector<8x128xf32>, vector<128x128xf32>, vector<8x128xf32> -> vector<8x128xf32>
    %c0_16 = arith.constant 0 : index
    %c0_17 = arith.constant 0 : index
    %28 = vector.load %arg5[%c0_16, %c0_17] : memref<1x128xf32, #tpu.memory_space<vmem>>, vector<1x128xf32>
    %c0_18 = arith.constant 0 : index
    %c0_19 = arith.constant 0 : index
    %29 = vector.load %arg6[%c0_18, %c0_19] : memref<1x128xf32, #tpu.memory_space<vmem>>, vector<1x128xf32>
    %cst_20 = arith.constant dense<0.000000e+00> : vector<128xf32>
    %30 = vector.multi_reduction <add>, %27, %cst_20 [0] : vector<8x128xf32> to vector<128xf32>
    %31 = vector.shape_cast %30 : vector<128xf32> to vector<1x128xf32>
    %cst_21 = arith.constant 8.000000e+00 : f32
    %32 = vector.broadcast %cst_21 : f32 to vector<1x128xf32>
    %33 = arith.divf %31, %32 : vector<1x128xf32>
    %34 = vector.broadcast %33 : vector<1x128xf32> to vector<8x128xf32>
    %35 = arith.subf %27, %34 : vector<8x128xf32>
    %36 = arith.mulf %35, %35 : vector<8x128xf32>
    %cst_22 = arith.constant dense<0.000000e+00> : vector<128xf32>
    %37 = vector.multi_reduction <add>, %36, %cst_22 [0] : vector<8x128xf32> to vector<128xf32>
    %38 = vector.shape_cast %37 : vector<128xf32> to vector<1x128xf32>
    %cst_23 = arith.constant 8.000000e+00 : f32
    %39 = vector.broadcast %cst_23 : f32 to vector<1x128xf32>
    %40 = arith.divf %38, %39 : vector<1x128xf32>
    %cst_24 = arith.constant 9.99999974E-6 : f32
    %41 = vector.broadcast %cst_24 : f32 to vector<1x128xf32>
    %42 = arith.addf %40, %41 : vector<1x128xf32>
    %43 = math.rsqrt %42 : vector<1x128xf32>
    %44 = arith.mulf %28, %43 : vector<1x128xf32>
    %45 = vector.broadcast %44 : vector<1x128xf32> to vector<8x128xf32>
    %46 = arith.mulf %35, %45 : vector<8x128xf32>
    %47 = vector.broadcast %29 : vector<1x128xf32> to vector<8x128xf32>
    %48 = arith.addf %46, %47 : vector<8x128xf32>
    %cst_25 = arith.constant 0.000000e+00 : f32
    %49 = vector.broadcast %cst_25 : f32 to vector<8x128xf32>
    %50 = arith.maximumf %48, %49 : vector<8x128xf32>
    %c0_26 = arith.constant 0 : index
    %c0_27 = arith.constant 0 : index
    %51 = vector.load %arg7[%c0_26, %c0_27] : memref<128x128xf32, #tpu.memory_space<vmem>>, vector<128x128xf32>
    %cst_28 = arith.constant dense<0.000000e+00> : vector<8x128xf32>
    %52 = tpu.matmul %50, %51, %cst_28 {dimension_numbers = #tpu.dot_dimension_numbers<[1], [0], [0], [1], [0, 0, 1, 1], [], []>} : vector<8x128xf32>, vector<128x128xf32>, vector<8x128xf32> -> vector<8x128xf32>
    %c0_29 = arith.constant 0 : index
    %c0_30 = arith.constant 0 : index
    %53 = vector.load %arg8[%c0_29, %c0_30] : memref<1x128xf32, #tpu.memory_space<vmem>>, vector<1x128xf32>
    %c0_31 = arith.constant 0 : index
    %c0_32 = arith.constant 0 : index
    %54 = vector.load %arg9[%c0_31, %c0_32] : memref<1x128xf32, #tpu.memory_space<vmem>>, vector<1x128xf32>
    %cst_33 = arith.constant dense<0.000000e+00> : vector<128xf32>
    %55 = vector.multi_reduction <add>, %52, %cst_33 [0] : vector<8x128xf32> to vector<128xf32>
    %56 = vector.shape_cast %55 : vector<128xf32> to vector<1x128xf32>
    %cst_34 = arith.constant 8.000000e+00 : f32
    %57 = vector.broadcast %cst_34 : f32 to vector<1x128xf32>
    %58 = arith.divf %56, %57 : vector<1x128xf32>
    %59 = vector.broadcast %58 : vector<1x128xf32> to vector<8x128xf32>
    %60 = arith.subf %52, %59 : vector<8x128xf32>
    %61 = arith.mulf %60, %60 : vector<8x128xf32>
    %cst_35 = arith.constant dense<0.000000e+00> : vector<128xf32>
    %62 = vector.multi_reduction <add>, %61, %cst_35 [0] : vector<8x128xf32> to vector<128xf32>
    %63 = vector.shape_cast %62 : vector<128xf32> to vector<1x128xf32>
    %cst_36 = arith.constant 8.000000e+00 : f32
    %64 = vector.broadcast %cst_36 : f32 to vector<1x128xf32>
    %65 = arith.divf %63, %64 : vector<1x128xf32>
    %cst_37 = arith.constant 9.99999974E-6 : f32
    %66 = vector.broadcast %cst_37 : f32 to vector<1x128xf32>
    %67 = arith.addf %65, %66 : vector<1x128xf32>
    %68 = math.rsqrt %67 : vector<1x128xf32>
    %69 = arith.mulf %53, %68 : vector<1x128xf32>
    %70 = vector.broadcast %69 : vector<1x128xf32> to vector<8x128xf32>
    %71 = arith.mulf %60, %70 : vector<8x128xf32>
    %72 = vector.broadcast %54 : vector<1x128xf32> to vector<8x128xf32>
    %73 = arith.addf %71, %72 : vector<8x128xf32>
    %cst_38 = arith.constant 0.000000e+00 : f32
    %74 = vector.broadcast %cst_38 : f32 to vector<8x128xf32>
    %75 = arith.maximumf %73, %74 : vector<8x128xf32>
    %c0_39 = arith.constant 0 : index
    %c0_40 = arith.constant 0 : index
    %76 = vector.load %arg10[%c0_39, %c0_40] : memref<128x128xf32, #tpu.memory_space<vmem>>, vector<128x128xf32>
    %cst_41 = arith.constant dense<0.000000e+00> : vector<8x128xf32>
    %77 = tpu.matmul %75, %76, %cst_41 {dimension_numbers = #tpu.dot_dimension_numbers<[1], [0], [0], [1], [0, 0, 1, 1], [], []>} : vector<8x128xf32>, vector<128x128xf32>, vector<8x128xf32> -> vector<8x128xf32>
    %c0_42 = arith.constant 0 : index
    %c0_43 = arith.constant 0 : index
    %78 = vector.load %arg11[%c0_42, %c0_43] : memref<1x128xf32, #tpu.memory_space<vmem>>, vector<1x128xf32>
    %c0_44 = arith.constant 0 : index
    %c0_45 = arith.constant 0 : index
    %79 = vector.load %arg12[%c0_44, %c0_45] : memref<1x128xf32, #tpu.memory_space<vmem>>, vector<1x128xf32>
    %cst_46 = arith.constant dense<0.000000e+00> : vector<128xf32>
    %80 = vector.multi_reduction <add>, %77, %cst_46 [0] : vector<8x128xf32> to vector<128xf32>
    %81 = vector.shape_cast %80 : vector<128xf32> to vector<1x128xf32>
    %cst_47 = arith.constant 8.000000e+00 : f32
    %82 = vector.broadcast %cst_47 : f32 to vector<1x128xf32>
    %83 = arith.divf %81, %82 : vector<1x128xf32>
    %84 = vector.broadcast %83 : vector<1x128xf32> to vector<8x128xf32>
    %85 = arith.subf %77, %84 : vector<8x128xf32>
    %86 = arith.mulf %85, %85 : vector<8x128xf32>
    %cst_48 = arith.constant dense<0.000000e+00> : vector<128xf32>
    %87 = vector.multi_reduction <add>, %86, %cst_48 [0] : vector<8x128xf32> to vector<128xf32>
    %88 = vector.shape_cast %87 : vector<128xf32> to vector<1x128xf32>
    %cst_49 = arith.constant 8.000000e+00 : f32
    %89 = vector.broadcast %cst_49 : f32 to vector<1x128xf32>
    %90 = arith.divf %88, %89 : vector<1x128xf32>
    %cst_50 = arith.constant 9.99999974E-6 : f32
    %91 = vector.broadcast %cst_50 : f32 to vector<1x128xf32>
    %92 = arith.addf %90, %91 : vector<1x128xf32>
    %93 = math.rsqrt %92 : vector<1x128xf32>
    %94 = arith.mulf %78, %93 : vector<1x128xf32>
    %95 = vector.broadcast %94 : vector<1x128xf32> to vector<8x128xf32>
    %96 = arith.mulf %85, %95 : vector<8x128xf32>
    %97 = vector.broadcast %79 : vector<1x128xf32> to vector<8x128xf32>
    %98 = arith.addf %96, %97 : vector<8x128xf32>
    %c0_51 = arith.constant 0 : index
    %c0_52 = arith.constant 0 : index
    %99 = vector.load %arg13[%c0_51, %c0_52] : memref<128x128xf32, #tpu.memory_space<vmem>>, vector<128x128xf32>
    %cst_53 = arith.constant dense<0.000000e+00> : vector<8x128xf32>
    %100 = tpu.matmul %98, %99, %cst_53 {dimension_numbers = #tpu.dot_dimension_numbers<[1], [0], [0], [1], [0, 0, 1, 1], [], []>} : vector<8x128xf32>, vector<128x128xf32>, vector<8x128xf32> -> vector<8x128xf32>
    %c0_54 = arith.constant 0 : index
    %c0_55 = arith.constant 0 : index
    %101 = vector.load %arg14[%c0_54, %c0_55] : memref<1x128xf32, #tpu.memory_space<vmem>>, vector<1x128xf32>
    %c0_56 = arith.constant 0 : index
    %c0_57 = arith.constant 0 : index
    %102 = vector.load %arg15[%c0_56, %c0_57] : memref<1x128xf32, #tpu.memory_space<vmem>>, vector<1x128xf32>
    %cst_58 = arith.constant dense<0.000000e+00> : vector<128xf32>
    %103 = vector.multi_reduction <add>, %100, %cst_58 [0] : vector<8x128xf32> to vector<128xf32>
    %104 = vector.shape_cast %103 : vector<128xf32> to vector<1x128xf32>
    %cst_59 = arith.constant 8.000000e+00 : f32
    %105 = vector.broadcast %cst_59 : f32 to vector<1x128xf32>
    %106 = arith.divf %104, %105 : vector<1x128xf32>
    %107 = vector.broadcast %106 : vector<1x128xf32> to vector<8x128xf32>
    %108 = arith.subf %100, %107 : vector<8x128xf32>
    %109 = arith.mulf %108, %108 : vector<8x128xf32>
    %cst_60 = arith.constant dense<0.000000e+00> : vector<128xf32>
    %110 = vector.multi_reduction <add>, %109, %cst_60 [0] : vector<8x128xf32> to vector<128xf32>
    %111 = vector.shape_cast %110 : vector<128xf32> to vector<1x128xf32>
    %cst_61 = arith.constant 8.000000e+00 : f32
    %112 = vector.broadcast %cst_61 : f32 to vector<1x128xf32>
    %113 = arith.divf %111, %112 : vector<1x128xf32>
    %cst_62 = arith.constant 9.99999974E-6 : f32
    %114 = vector.broadcast %cst_62 : f32 to vector<1x128xf32>
    %115 = arith.addf %113, %114 : vector<1x128xf32>
    %116 = math.rsqrt %115 : vector<1x128xf32>
    %117 = arith.mulf %101, %116 : vector<1x128xf32>
    %118 = vector.broadcast %117 : vector<1x128xf32> to vector<8x128xf32>
    %119 = arith.mulf %108, %118 : vector<8x128xf32>
    %120 = vector.broadcast %102 : vector<1x128xf32> to vector<8x128xf32>
    %121 = arith.addf %119, %120 : vector<8x128xf32>
    %c0_63 = arith.constant 0 : index
    %c0_64 = arith.constant 0 : index
    %122 = vector.load %arg16[%c0_63, %c0_64] : memref<128x128xf32, #tpu.memory_space<vmem>>, vector<128x128xf32>
    %cst_65 = arith.constant dense<0.000000e+00> : vector<8x128xf32>
    %123 = tpu.matmul %121, %122, %cst_65 {dimension_numbers = #tpu.dot_dimension_numbers<[1], [0], [0], [1], [0, 0, 1, 1], [], []>} : vector<8x128xf32>, vector<128x128xf32>, vector<8x128xf32> -> vector<8x128xf32>
    %c0_66 = arith.constant 0 : index
    %c0_67 = arith.constant 0 : index
    %124 = vector.load %arg17[%c0_66, %c0_67] : memref<1x128xf32, #tpu.memory_space<vmem>>, vector<1x128xf32>
    %c0_68 = arith.constant 0 : index
    %c0_69 = arith.constant 0 : index
    %125 = vector.load %arg18[%c0_68, %c0_69] : memref<1x128xf32, #tpu.memory_space<vmem>>, vector<1x128xf32>
    %cst_70 = arith.constant dense<0.000000e+00> : vector<128xf32>
    %126 = vector.multi_reduction <add>, %123, %cst_70 [0] : vector<8x128xf32> to vector<128xf32>
    %127 = vector.shape_cast %126 : vector<128xf32> to vector<1x128xf32>
    %cst_71 = arith.constant 8.000000e+00 : f32
    %128 = vector.broadcast %cst_71 : f32 to vector<1x128xf32>
    %129 = arith.divf %127, %128 : vector<1x128xf32>
    %130 = vector.broadcast %129 : vector<1x128xf32> to vector<8x128xf32>
    %131 = arith.subf %123, %130 : vector<8x128xf32>
    %132 = arith.mulf %131, %131 : vector<8x128xf32>
    %cst_72 = arith.constant dense<0.000000e+00> : vector<128xf32>
    %133 = vector.multi_reduction <add>, %132, %cst_72 [0] : vector<8x128xf32> to vector<128xf32>
    %134 = vector.shape_cast %133 : vector<128xf32> to vector<1x128xf32>
    %cst_73 = arith.constant 8.000000e+00 : f32
    %135 = vector.broadcast %cst_73 : f32 to vector<1x128xf32>
    %136 = arith.divf %134, %135 : vector<1x128xf32>
    %cst_74 = arith.constant 9.99999974E-6 : f32
    %137 = vector.broadcast %cst_74 : f32 to vector<1x128xf32>
    %138 = arith.addf %136, %137 : vector<1x128xf32>
    %139 = math.rsqrt %138 : vector<1x128xf32>
    %140 = arith.mulf %124, %139 : vector<1x128xf32>
    %141 = vector.broadcast %140 : vector<1x128xf32> to vector<8x128xf32>
    %142 = arith.mulf %131, %141 : vector<8x128xf32>
    %143 = vector.broadcast %125 : vector<1x128xf32> to vector<8x128xf32>
    %144 = arith.addf %142, %143 : vector<8x128xf32>
    %c0_75 = arith.constant 0 : index
    %c0_76 = arith.constant 0 : index
    %145 = vector.load %arg31[%c0_75, %c0_76] : memref<8x128xf32, #tpu.memory_space<vmem>>, vector<8x128xf32>
    tpu.vector_store %arg31[%c0_75, %c0_76], %144 {strides = array<i32>} : memref<8x128xf32, #tpu.memory_space<vmem>>, vector<8x128xf32>,
    %c0_77 = arith.constant 0 : index
    %c0_78 = arith.constant 0 : index
    %146 = vector.load %arg19[%c0_77, %c0_78] : memref<128x128xf32, #tpu.memory_space<vmem>>, vector<128x128xf32>
    %cst_79 = arith.constant dense<0.000000e+00> : vector<8x128xf32>
    %147 = tpu.matmul %144, %146, %cst_79 {dimension_numbers = #tpu.dot_dimension_numbers<[1], [0], [0], [1], [0, 0, 1, 1], [], []>} : vector<8x128xf32>, vector<128x128xf32>, vector<8x128xf32> -> vector<8x128xf32>
    %c0_80 = arith.constant 0 : index
    %c0_81 = arith.constant 0 : index
    %148 = vector.load %arg20[%c0_80, %c0_81] : memref<1x128xf32, #tpu.memory_space<vmem>>, vector<1x128xf32>
    %c0_82 = arith.constant 0 : index
    %c0_83 = arith.constant 0 : index
    %149 = vector.load %arg21[%c0_82, %c0_83] : memref<1x128xf32, #tpu.memory_space<vmem>>, vector<1x128xf32>
    %cst_84 = arith.constant dense<0.000000e+00> : vector<128xf32>
    %150 = vector.multi_reduction <add>, %147, %cst_84 [0] : vector<8x128xf32> to vector<128xf32>
    %151 = vector.shape_cast %150 : vector<128xf32> to vector<1x128xf32>
    %cst_85 = arith.constant 8.000000e+00 : f32
    %152 = vector.broadcast %cst_85 : f32 to vector<1x128xf32>
    %153 = arith.divf %151, %152 : vector<1x128xf32>
    %154 = vector.broadcast %153 : vector<1x128xf32> to vector<8x128xf32>
    %155 = arith.subf %147, %154 : vector<8x128xf32>
    %156 = arith.mulf %155, %155 : vector<8x128xf32>
    %cst_86 = arith.constant dense<0.000000e+00> : vector<128xf32>
    %157 = vector.multi_reduction <add>, %156, %cst_86 [0] : vector<8x128xf32> to vector<128xf32>
    %158 = vector.shape_cast %157 : vector<128xf32> to vector<1x128xf32>
    %cst_87 = arith.constant 8.000000e+00 : f32
    %159 = vector.broadcast %cst_87 : f32 to vector<1x128xf32>
    %160 = arith.divf %158, %159 : vector<1x128xf32>
    %cst_88 = arith.constant 9.99999974E-6 : f32
    %161 = vector.broadcast %cst_88 : f32 to vector<1x128xf32>
    %162 = arith.addf %160, %161 : vector<1x128xf32>
    %163 = math.rsqrt %162 : vector<1x128xf32>
    %164 = arith.mulf %148, %163 : vector<1x128xf32>
    %165 = vector.broadcast %164 : vector<1x128xf32> to vector<8x128xf32>
    %166 = arith.mulf %155, %165 : vector<8x128xf32>
    %167 = vector.broadcast %149 : vector<1x128xf32> to vector<8x128xf32>
    %168 = arith.addf %166, %167 : vector<8x128xf32>
    %cst_89 = arith.constant 0.000000e+00 : f32
    %169 = vector.broadcast %cst_89 : f32 to vector<8x128xf32>
    %170 = arith.maximumf %168, %169 : vector<8x128xf32>
    %c0_90 = arith.constant 0 : index
    %c0_91 = arith.constant 0 : index
    %171 = vector.load %arg22[%c0_90, %c0_91] : memref<128x128xf32, #tpu.memory_space<vmem>>, vector<128x128xf32>
    %cst_92 = arith.constant dense<0.000000e+00> : vector<8x128xf32>
    %172 = tpu.matmul %170, %171, %cst_92 {dimension_numbers = #tpu.dot_dimension_numbers<[1], [0], [0], [1], [0, 0, 1, 1], [], []>} : vector<8x128xf32>, vector<128x128xf32>, vector<8x128xf32> -> vector<8x128xf32>
    %c0_93 = arith.constant 0 : index
    %c0_94 = arith.constant 0 : index
    %173 = vector.load %arg23[%c0_93, %c0_94] : memref<1x128xf32, #tpu.memory_space<vmem>>, vector<1x128xf32>
    %c0_95 = arith.constant 0 : index
    %c0_96 = arith.constant 0 : index
    %174 = vector.load %arg24[%c0_95, %c0_96] : memref<1x128xf32, #tpu.memory_space<vmem>>, vector<1x128xf32>
    %cst_97 = arith.constant dense<0.000000e+00> : vector<128xf32>
    %175 = vector.multi_reduction <add>, %172, %cst_97 [0] : vector<8x128xf32> to vector<128xf32>
    %176 = vector.shape_cast %175 : vector<128xf32> to vector<1x128xf32>
    %cst_98 = arith.constant 8.000000e+00 : f32
    %177 = vector.broadcast %cst_98 : f32 to vector<1x128xf32>
    %178 = arith.divf %176, %177 : vector<1x128xf32>
    %179 = vector.broadcast %178 : vector<1x128xf32> to vector<8x128xf32>
    %180 = arith.subf %172, %179 : vector<8x128xf32>
    %181 = arith.mulf %180, %180 : vector<8x128xf32>
    %cst_99 = arith.constant dense<0.000000e+00> : vector<128xf32>
    %182 = vector.multi_reduction <add>, %181, %cst_99 [0] : vector<8x128xf32> to vector<128xf32>
    %183 = vector.shape_cast %182 : vector<128xf32> to vector<1x128xf32>
    %cst_100 = arith.constant 8.000000e+00 : f32
    %184 = vector.broadcast %cst_100 : f32 to vector<1x128xf32>
    %185 = arith.divf %183, %184 : vector<1x128xf32>
    %cst_101 = arith.constant 9.99999974E-6 : f32
    %186 = vector.broadcast %cst_101 : f32 to vector<1x128xf32>
    %187 = arith.addf %185, %186 : vector<1x128xf32>
    %188 = math.rsqrt %187 : vector<1x128xf32>
    %189 = arith.mulf %173, %188 : vector<1x128xf32>
    %190 = vector.broadcast %189 : vector<1x128xf32> to vector<8x128xf32>
    %191 = arith.mulf %180, %190 : vector<8x128xf32>
    %192 = vector.broadcast %174 : vector<1x128xf32> to vector<8x128xf32>
    %193 = arith.addf %191, %192 : vector<8x128xf32>
    %cst_102 = arith.constant 0.000000e+00 : f32
    %194 = vector.broadcast %cst_102 : f32 to vector<8x128xf32>
    %195 = arith.maximumf %193, %194 : vector<8x128xf32>
    %c0_103 = arith.constant 0 : index
    %c0_104 = arith.constant 0 : index
    %196 = vector.load %arg25[%c0_103, %c0_104] : memref<128x128xf32, #tpu.memory_space<vmem>>, vector<128x128xf32>
    %cst_105 = arith.constant dense<0.000000e+00> : vector<8x128xf32>
    %197 = tpu.matmul %195, %196, %cst_105 {dimension_numbers = #tpu.dot_dimension_numbers<[1], [0], [0], [1], [0, 0, 1, 1], [], []>} : vector<8x128xf32>, vector<128x128xf32>, vector<8x128xf32> -> vector<8x128xf32>
    %c0_106 = arith.constant 0 : index
    %c0_107 = arith.constant 0 : index
    %198 = vector.load %arg26[%c0_106, %c0_107] : memref<1x128xf32, #tpu.memory_space<vmem>>, vector<1x128xf32>
    %c0_108 = arith.constant 0 : index
    %c0_109 = arith.constant 0 : index
    %199 = vector.load %arg27[%c0_108, %c0_109] : memref<1x128xf32, #tpu.memory_space<vmem>>, vector<1x128xf32>
    %cst_110 = arith.constant dense<0.000000e+00> : vector<128xf32>
    %200 = vector.multi_reduction <add>, %197, %cst_110 [0] : vector<8x128xf32> to vector<128xf32>
    %201 = vector.shape_cast %200 : vector<128xf32> to vector<1x128xf32>
    %cst_111 = arith.constant 8.000000e+00 : f32
    %202 = vector.broadcast %cst_111 : f32 to vector<1x128xf32>
    %203 = arith.divf %201, %202 : vector<1x128xf32>
    %204 = vector.broadcast %203 : vector<1x128xf32> to vector<8x128xf32>
    %205 = arith.subf %197, %204 : vector<8x128xf32>
    %206 = arith.mulf %205, %205 : vector<8x128xf32>
    %cst_112 = arith.constant dense<0.000000e+00> : vector<128xf32>
    %207 = vector.multi_reduction <add>, %206, %cst_112 [0] : vector<8x128xf32> to vector<128xf32>
    %208 = vector.shape_cast %207 : vector<128xf32> to vector<1x128xf32>
    %cst_113 = arith.constant 8.000000e+00 : f32
    %209 = vector.broadcast %cst_113 : f32 to vector<1x128xf32>
    %210 = arith.divf %208, %209 : vector<1x128xf32>
    %cst_114 = arith.constant 9.99999974E-6 : f32
    %211 = vector.broadcast %cst_114 : f32 to vector<1x128xf32>
    %212 = arith.addf %210, %211 : vector<1x128xf32>
    %213 = math.rsqrt %212 : vector<1x128xf32>
    %214 = arith.mulf %198, %213 : vector<1x128xf32>
    %215 = vector.broadcast %214 : vector<1x128xf32> to vector<8x128xf32>
    %216 = arith.mulf %205, %215 : vector<8x128xf32>
    %217 = vector.broadcast %199 : vector<1x128xf32> to vector<8x128xf32>
    %218 = arith.addf %216, %217 : vector<8x128xf32>
    %cst_115 = arith.constant 0.000000e+00 : f32
    %219 = vector.broadcast %cst_115 : f32 to vector<8x128xf32>
    %220 = arith.maximumf %218, %219 : vector<8x128xf32>
    %c0_116 = arith.constant 0 : index
    %c0_117 = arith.constant 0 : index
    %221 = vector.load %arg28[%c0_116, %c0_117] : memref<128x128xf32, #tpu.memory_space<vmem>>, vector<128x128xf32>
    %cst_118 = arith.constant dense<0.000000e+00> : vector<8x128xf32>
    %222 = tpu.matmul %220, %221, %cst_118 {dimension_numbers = #tpu.dot_dimension_numbers<[1], [0], [0], [1], [0, 0, 1, 1], [], []>} : vector<8x128xf32>, vector<128x128xf32>, vector<8x128xf32> -> vector<8x128xf32>
    %c0_119 = arith.constant 0 : index
    %c0_120 = arith.constant 0 : index
    %223 = vector.load %arg29[%c0_119, %c0_120] : memref<1x128xf32, #tpu.memory_space<vmem>>, vector<1x128xf32>
    %224 = vector.broadcast %223 : vector<1x128xf32> to vector<8x128xf32>
    %225 = arith.addf %222, %224 : vector<8x128xf32>
    %cst_121 = arith.constant 0.000000e+00 : f32
    %226 = vector.broadcast %cst_121 : f32 to vector<8x128xf32>
    %227 = arith.maximumf %225, %226 : vector<8x128xf32>
    %c0_122 = arith.constant 0 : index
    %c0_123 = arith.constant 0 : index
    %228 = vector.load %arg30[%c0_122, %c0_123] : memref<8x128xf32, #tpu.memory_space<vmem>>, vector<8x128xf32>
    tpu.vector_store %arg30[%c0_122, %c0_123], %227 {strides = array<i32>} : memref<8x128xf32, #tpu.memory_space<vmem>>, vector<8x128xf32>,
    return
  }
}

</mosaic_0001>

<bundles_post_ra>
// kernel: ae_forward.1
= control target key start
LH: loop header
LB: loop body
LE: loop exit
PB: predicated region body
PF: predicated region fallthrough
CT: control target
= control target key end

     0   :  { %s1459_s6 = smov 1   ;;  %s1460_s10 = smov 2   ;;  %s1808_s0 = inlined_call_operand.smem [shape: u32[32], index: -1, kind: input, shape index: {}] }
   0x1   :  { %s1513_s5 = sld [smem:[%s1808_s0]]   ;;  %s1461_s14 = smov 3  }
   0x2   :  { %s1518_s9 = sld [smem:[%s1808_s0 + %s1459_s6]]   ;;  %s1462_s18 = smov 4  }
   0x3   :  { %s1523_s13 = sld [smem:[%s1808_s0 + %s1460_s10]]   ;;  %s1463_s22 = smov 5  }
   0x4   :  { %s1528_s17 = sld [smem:[%s1808_s0 + %s1461_s14]]   ;;  %s1464_s26 = smov 6  }
   0x5   :  { %s1533_s21 = sld [smem:[%s1808_s0 + %s1462_s18]]   ;;  %s1465_s30 = smov 7  }
   0x6   :  { %s1538_s25 = sld [smem:[%s1808_s0 + %s1463_s22]]   ;;  %s1466_s4 = smov 8  }
   0x7   :  { %s1543_s29 = sld [smem:[%s1808_s0 + %s1464_s26]]   ;;  %s1467_s10 = smov 9  }
   0x8   :  { %s1548_s3 = sld [smem:[%s1808_s0 + %s1465_s30]]   ;;  %s1468_s15 = smov 10  }
   0x9   :  { %s1553_s8 = sld [smem:[%s1808_s0 + %s1466_s4]]   ;;  %s1469_s20 = smov 11  }
   0xa   :  { %s1558_s14 = sld [smem:[%s1808_s0 + %s1467_s10]]   ;;  %s1470_s26 = smov 12  }
   0xb   :  { %s1563_s19 = sld [smem:[%s1808_s0 + %s1468_s15]]   ;;  %s1471_s1 = smov 13  }
   0xc   :  { %s1568_s24 = sld [smem:[%s1808_s0 + %s1469_s20]]   ;;  %s1472_s7 = smov 14  }
   0xd   :  { %s1573_s30 = sld [smem:[%s1808_s0 + %s1470_s26]]   ;;  %s1473_s15 = smov 15  }
   0xe   :  { %s1578_s6 = sld [smem:[%s1808_s0 + %s1471_s1]]   ;;  %s1474_s22 = smov 16  }
   0xf   :  { %1809 = sst [smem:[#allocation30_spill]] %s1553_s8  ;;  %s1475_s28 = smov 17  }
  0x10   :  { %1810 = sst [smem:[#allocation31_spill]] %s1558_s14 }
  0x11   :  { %s1583_s12 = sld [smem:[%s1808_s0 + %s1472_s7]]   ;;  %s1476_s7 = smov 18  }
  0x12   :  { %1811 = sst [smem:[#allocation32_spill]] %s1568_s24 }
  0x13   :  { %1812 = sst [smem:[#allocation33_spill]] %s1573_s30 }
  0x14   :  { %s1588_s20 = sld [smem:[%s1808_s0 + %s1473_s15]]   ;;  %s1477_s15 = smov 19  }
  0x15   :  { %s1593_s27 = sld [smem:[%s1808_s0 + %s1474_s22]]   ;;  %s1478_s22 = smov 20  }
  0x16   :  { %s1598_s4 = sld [smem:[%s1808_s0 + %s1475_s28]]   ;;  %s1479_s28 = smov 21  }
  0x17   :  { %1813 = sst [smem:[#allocation34_spill]] %s1583_s12 }
  0x18   :  { %s1603_s12 = sld [smem:[%s1808_s0 + %s1476_s7]]   ;;  %s1480_s7 = smov 22  }
  0x19   :  { %s1613_s30 = sld [smem:[%s1808_s0 + %s1478_s22]]   ;;  %s1482_s22 = smov 24  }
  0x1a   :  { %1814 = sst [smem:[#allocation35_spill]] %s1588_s20 }
  0x1b   :  { %s1608_s20 = sld [smem:[%s1808_s0 + %s1477_s15]]   ;;  %s1481_s15 = smov 23  }
  0x1c   :  { %1815 = sst [smem:[#allocation36_spill]] %s1598_s4 }
  0x1d   :  { %s1618_s4 = sld [smem:[%s1808_s0 + %s1479_s28]]   ;;  %s1483_s28 = smov 25  }
  0x1e   :  { %1816 = sst [smem:[#allocation37_spill]] %s1603_s12 }
  0x1f   :  { %1817 = sst [smem:[#allocation38_spill]] %s1613_s30 }
  0x20   :  { %s1623_s12 = sld [smem:[%s1808_s0 + %s1480_s7]]   ;;  %s1484_s7 = smov 26  }
  0x21   :  { %s1628_s24 = sld [smem:[%s1808_s0 + %s1481_s15]]   ;;  %s1485_s15 = smov 27  }
  0x22   :  { %s1633_s30 = sld [smem:[%s1808_s0 + %s1482_s22]]   ;;  %s1486_s22 = smov 28  }
  0x23   :  { %1818 = sst [smem:[#allocation39_spill]] %s1618_s4 }
  0x24   :  { %s1638_s4 = sld [smem:[%s1808_s0 + %s1483_s28]]   ;;  %s1487_s28 = smov 29  }
  0x25   :  { %s1643_s14 = sld [smem:[%s1808_s0 + %s1484_s7]]   ;;  %s1488_s7 = smov 30  }
  0x26   :  { %s1658_s8 = sld [smem:[%s1808_s0 + %s1487_s28]]  }
  0x27   :  { %1819 = sst [smem:[#allocation40_spill]] %s1628_s24 }
  0x28   :  { %1820 = sst [smem:[#allocation41_spill]] %s1633_s30 }
  0x29   :  { %s1648_s24 = sld [smem:[%s1808_s0 + %s1485_s15]]   ;;  %s1489_s15 = smov 31  }
  0x2a   :  { %s1653_s30 = sld [smem:[%s1808_s0 + %s1486_s22]]  }
  0x2b   :  { %1821 = sst [smem:[#allocation42_spill]] %s1643_s14 }
  0x2c   :  { %s1663_s14 = sld [smem:[%s1808_s0 + %s1488_s7]]  }
  0x2f   :  { %1822 = sst [smem:[#allocation43_spill]] %s1648_s24 }
  0x30   :  { %s1668_s24 = sld [smem:[%s1808_s0 + %s1489_s15]]  }
  0x31   :  { %69 = vsyncpa [#allocation3], 0 }
  0x32   :  { %70 = vsyncpa [#allocation6], 0 }
  0x33   :  { %71 = vsyncpa [#allocation9], 0 }
  0x34   :  { %72 = vsyncpa [#allocation12], 0 }
  0x35   :  { %73 = vsyncpa [#allocation15], 0 }
  0x36   :  { %74 = vsyncpa [#allocation18], 0 }
  0x37   :  { %75 = vsyncpa [#allocation4], 0 }
  0x38   :  { %76 = vsyncpa [#allocation21], 0  ;;  %s100_s22 = sshll.u32 %s1533_s21, 4  ;;  %s1490_s23 = smov [#allocation5]   ;;  %s101_s22 = int_to_ptr.hbm [resolvable:$true] %s100_s22 }
  0x39   :  { %s102_s26 = sshll.u32 %s1490_s23, 4  ;;  %s134_s28 = sshll.u32 %s1563_s19, 4  ;;  %s103_s26 = int_to_ptr.vmem [resolvable:$true] %s102_s26  ;;  %s135_s28 = int_to_ptr.hbm [resolvable:$true] %s134_s28 }
  0x3a   :  { %s1155_s0 = sshra.s32 %s101_s22, 4  ;;  %s1159_s2 = scalar_lea.hbm %s1533_s21, 128  ;;  %s1156_s0 = int_to_ptr.hbm [resolvable:$true] %s1155_s0 }
  0x3b   :  { %s1157_s1 = scalar_lea.hbm %s1156_s0, 128  ;;  %p1160_p1 = scmp.lt.s32.totalorder %s1156_s0, %s1533_s21 }
  0x3c   :  { %p1158_p0 = scmp.ne.s32.totalorder %s1156_s0, %s1157_s1  ;;  %p1161_p2 = scmp.lt.s32.totalorder %s1159_s2, %s1157_s1 }
  0x3e   :  { %p1162_p3 = por %p1161_p2, %p1160_p1 }
  0x40   :  { %p1163_p4 = pnand %p1162_p3, %p1158_p0 }
  0x42   :  { %1166 = shalt.err (!%p1163_p4)
}
  0x43   :  { %s1491_s7 = smov 128   ;;  %s1492_s10 = smov 8  }
  0x44   :  { %108 = dma.hbm_to_vmem [thread:$0]  %s101_s22, 2048, %s103_s26, [#allocation6], %s1491_s7, %s1491_s7, %s1492_s10  }
  0x45   :  { %s1493_s11 = smov [#allocation8]   ;;  %s168_s16 = sshll.u32 %s1593_s27, 4  ;;  %s1678_s16 = int_to_ptr.hbm [resolvable:$true] %s168_s16 }
  0x46   :  { %s136_s15 = sshll.u32 %s1493_s11, 4  ;;  %s1179_s21 = sshra.s32 %s135_s28, 4  ;;  %s137_s15 = int_to_ptr.vmem [resolvable:$true] %s136_s15  ;;  %s1180_s21 = int_to_ptr.hbm [resolvable:$true] %s1179_s21 }
  0x47   :  { %s1181_s18 = scalar_lea.hbm %s1180_s21, 128  ;;  %s1183_s23 = scalar_lea.hbm %s1563_s19, 128 }
  0x48   :  { %p1182_p5 = scmp.ne.s32.totalorder %s1180_s21, %s1181_s18  ;;  %p1184_p6 = scmp.lt.s32.totalorder %s1180_s21, %s1563_s19 }
  0x49   :  { %p1185_p7 = scmp.lt.s32.totalorder %s1183_s23, %s1181_s18 }
  0x4b   :  { %p1186_p8 = por %p1185_p7, %p1184_p6 }
  0x4d   :  { %p1187_p9 = pnand %p1186_p8, %p1182_p5 }
  0x4f   :  { %1190 = shalt.err (!%p1187_p9)
}
  0x50   :  { %142 = dma.hbm_to_vmem [thread:$0]  %s135_s28, 2048, %s137_s15, [#allocation9], %s1491_s7, %s1491_s7, %s1492_s10  }
  0x51   :  { %s202_s22 = sshll.u32 %s1623_s12, 4  ;;  %s1494_s26 = smov [#allocation11]   ;;  %s1686_s22 = int_to_ptr.hbm [resolvable:$true] %s202_s22 }
  0x52   :  { %s170_s0 = sshll.u32 %s1494_s26, 4  ;;  %s1203_s1 = sshra.s32 %s1678_s16, 4  ;;  %s171_s0 = int_to_ptr.vmem [resolvable:$true] %s170_s0  ;;  %s1204_s1 = int_to_ptr.hbm [resolvable:$true] %s1203_s1 }
  0x53   :  { %s1205_s19 = scalar_lea.hbm %s1204_s1, 128  ;;  %s1207_s2 = scalar_lea.hbm %s1593_s27, 128 }
  0x54   :  { %p1206_p10 = scmp.ne.s32.totalorder %s1204_s1, %s1205_s19  ;;  %p1208_p11 = scmp.lt.s32.totalorder %s1204_s1, %s1593_s27 }
  0x55   :  { %p1209_p12 = scmp.lt.s32.totalorder %s1207_s2, %s1205_s19 }
  0x57   :  { %p1210_p13 = por %p1209_p12, %p1208_p11 }
  0x59   :  { %p1211_p0 = pnand %p1210_p13, %p1206_p10 }
  0x5b   :  { %1214 = shalt.err (!%p1211_p0)
}
  0x5c   :  { %176 = dma.hbm_to_vmem [thread:$0]  %s1678_s16, 2048, %s171_s0, [#allocation12], %s1491_s7, %s1491_s7, %s1492_s10  }
  0x5d   :  { %s1495_s28 = smov [#allocation14]   ;;  %s83_s15 = sshll.u32 %s1518_s9, 4  ;;  %s1696_s15 = int_to_ptr.hbm [resolvable:$true] %s83_s15 }
  0x5e   :  { %s204_s11 = sshll.u32 %s1495_s28, 4  ;;  %s1227_s27 = sshra.s32 %s1686_s22, 4  ;;  %s205_s11 = int_to_ptr.vmem [resolvable:$true] %s204_s11  ;;  %s1228_s27 = int_to_ptr.hbm [resolvable:$true] %s1227_s27 }
  0x5f   :  { %s1229_s21 = scalar_lea.hbm %s1228_s27, 128  ;;  %s1231_s18 = scalar_lea.hbm %s1623_s12, 128 }
  0x60   :  { %p1230_p1 = scmp.ne.s32.totalorder %s1228_s27, %s1229_s21  ;;  %p1232_p2 = scmp.lt.s32.totalorder %s1228_s27, %s1623_s12 }
  0x61   :  { %p1233_p3 = scmp.lt.s32.totalorder %s1231_s18, %s1229_s21 }
  0x63   :  { %p1234_p4 = por %p1233_p3, %p1232_p2 }
  0x65   :  { %p1235_p5 = pnand %p1234_p4, %p1230_p1 }
  0x67   :  { %1238 = shalt.err (!%p1235_p5)
}
  0x68   :  { %210 = dma.hbm_to_vmem [thread:$0]  %s1686_s22, 2048, %s205_s11, [#allocation15], %s1491_s7, %s1491_s7, %s1492_s10  }
  0x69   :  { %s117_s16 = sshll.u32 %s1548_s3, 4  ;;  %s1496_s23 = smov [#allocation2]   ;;  %s1706_s16 = int_to_ptr.hbm [resolvable:$true] %s117_s16 }
  0x6a   :  { %s85_s26 = sshll.u32 %s1496_s23, 4  ;;  %s1251_s12 = sshra.s32 %s1696_s15, 4  ;;  %s86_s26 = int_to_ptr.vmem [resolvable:$true] %s85_s26  ;;  %s1252_s12 = int_to_ptr.hbm [resolvable:$true] %s1251_s12 }
  0x6b   :  { %s1253_s0 = scalar_lea.hbm %s1252_s12, 128  ;;  %s1255_s1 = scalar_lea.hbm %s1518_s9, 128 }
  0x6c   :  { %p1254_p6 = scmp.ne.s32.totalorder %s1252_s12, %s1253_s0  ;;  %p1256_p7 = scmp.lt.s32.totalorder %s1252_s12, %s1518_s9 }
  0x6d   :  { %p1257_p8 = scmp.lt.s32.totalorder %s1255_s1, %s1253_s0 }
  0x6f   :  { %p1258_p9 = por %p1257_p8, %p1256_p7 }
  0x71   :  { %p1259_p10 = pnand %p1258_p9, %p1254_p6 }
  0x73   :  { %1262 = shalt.err (!%p1259_p10)
}
  0x74   :  { %91 = dma.hbm_to_vmem [thread:$0]  %s1696_s15, 2048, %s86_s26, [#allocation3], %s1491_s7, %s1491_s7, %s1492_s10  }
  0x75   :  { %s1497_s22 = smov [#allocation7]   ;;  %s151_s2 = sshll.u32 %s1578_s6, 4  ;;  %s1716_s2 = int_to_ptr.hbm [resolvable:$true] %s151_s2 }
  0x76   :  { %s119_s19 = sshll.u32 %s1497_s22, 4  ;;  %s1275_s9 = sshra.s32 %s1706_s16, 4  ;;  %s120_s19 = int_to_ptr.vmem [resolvable:$true] %s119_s19  ;;  %s1276_s9 = int_to_ptr.hbm [resolvable:$true] %s1275_s9 }
  0x77   :  { %s1277_s28 = scalar_lea.hbm %s1276_s9, 128  ;;  %s1279_s11 = scalar_lea.hbm %s1548_s3, 128 }
  0x78   :  { %p1278_p11 = scmp.ne.s32.totalorder %s1276_s9, %s1277_s28  ;;  %p1280_p12 = scmp.lt.s32.totalorder %s1276_s9, %s1548_s3 }
  0x79   :  { %p1281_p13 = scmp.lt.s32.totalorder %s1279_s11, %s1277_s28 }
  0x7b   :  { %p1282_p0 = por %p1281_p13, %p1280_p12 }
  0x7d   :  { %p1283_p1 = pnand %p1282_p0, %p1278_p11 }
  0x7f   :  { %1286 = shalt.err (!%p1283_p1)
}
  0x80   :  { %125 = dma.hbm_to_vmem [thread:$0]  %s1706_s16, 2048, %s120_s19, [#allocation6], %s1491_s7, %s1491_s7, %s1492_s10  }
  0x81   :  { %s185_s15 = sshll.u32 %s1608_s20, 4  ;;  %s1498_s27 = smov [#allocation10]   ;;  %s1726_s15 = int_to_ptr.hbm [resolvable:$true] %s185_s15 }
  0x82   :  { %s153_s21 = sshll.u32 %s1498_s27, 4  ;;  %s1299_s3 = sshra.s32 %s1716_s2, 4  ;;  %s154_s21 = int_to_ptr.vmem [resolvable:$true] %s153_s21  ;;  %s1300_s3 = int_to_ptr.hbm [resolvable:$true] %s1299_s3 }
  0x83   :  { %s1301_s18 = scalar_lea.hbm %s1300_s3, 128  ;;  %s1303_s23 = scalar_lea.hbm %s1578_s6, 128 }
  0x84   :  { %p1302_p2 = scmp.ne.s32.totalorder %s1300_s3, %s1301_s18  ;;  %p1304_p3 = scmp.lt.s32.totalorder %s1300_s3, %s1578_s6 }
  0x85   :  { %p1305_p4 = scmp.lt.s32.totalorder %s1303_s23, %s1301_s18 }
  0x87   :  { %p1306_p5 = por %p1305_p4, %p1304_p3 }
  0x89   :  { %p1307_p6 = pnand %p1306_p5, %p1302_p2 }
  0x8b   :  { %1310 = shalt.err (!%p1307_p6)
}
  0x8c   :  { %159 = dma.hbm_to_vmem [thread:$0]  %s1716_s2, 2048, %s154_s21, [#allocation9], %s1491_s7, %s1491_s7, %s1492_s10  }
  0x8d   :  { %s1499_s16 = smov [#allocation13]   ;;  %s219_s12 = sshll.u32 %s1638_s4, 4  ;;  %s1736_s12 = int_to_ptr.hbm [resolvable:$true] %s219_s12 }
  0x8e   :  { %s187_s26 = sshll.u32 %s1499_s16, 4  ;;  %s1323_s6 = sshra.s32 %s1726_s15, 4  ;;  %s188_s26 = int_to_ptr.vmem [resolvable:$true] %s187_s26  ;;  %s1324_s6 = int_to_ptr.hbm [resolvable:$true] %s1323_s6 }
  0x8f   :  { %s1325_s0 = scalar_lea.hbm %s1324_s6, 128  ;;  %s1327_s1 = scalar_lea.hbm %s1608_s20, 128 }
  0x90   :  { %p1326_p7 = scmp.ne.s32.totalorder %s1324_s6, %s1325_s0  ;;  %p1328_p8 = scmp.lt.s32.totalorder %s1324_s6, %s1608_s20 }
  0x91   :  { %p1329_p9 = scmp.lt.s32.totalorder %s1327_s1, %s1325_s0 }
  0x93   :  { %p1330_p10 = por %p1329_p9, %p1328_p8 }
  0x95   :  { %p1331_p11 = pnand %p1330_p10, %p1326_p7 }
  0x97   :  { %1334 = shalt.err (!%p1331_p11)
}
  0x98   :  { %193 = dma.hbm_to_vmem [thread:$0]  %s1726_s15, 2048, %s188_s26, [#allocation12], %s1491_s7, %s1491_s7, %s1492_s10  }
  0x99   :  { %s236_s22 = sshll.u32 %s1653_s30, 4  ;;  %s1500_s19 = smov [#allocation16]   ;;  %s1746_s22 = int_to_ptr.hbm [resolvable:$true] %s236_s22 }
  0x9a   :  { %s221_s2 = sshll.u32 %s1500_s19, 4  ;;  %s1347_s20 = sshra.s32 %s1736_s12, 4  ;;  %s222_s2 = int_to_ptr.vmem [resolvable:$true] %s221_s2  ;;  %s1348_s20 = int_to_ptr.hbm [resolvable:$true] %s1347_s20 }
  0x9b   :  { %s1349_s9 = scalar_lea.hbm %s1348_s20, 128  ;;  %s1351_s28 = scalar_lea.hbm %s1638_s4, 128 }
  0x9c   :  { %p1350_p12 = scmp.ne.s32.totalorder %s1348_s20, %s1349_s9  ;;  %p1352_p13 = scmp.lt.s32.totalorder %s1348_s20, %s1638_s4 }
  0x9d   :  { %p1353_p0 = scmp.lt.s32.totalorder %s1351_s28, %s1349_s9 }
  0x9f   :  { %p1354_p1 = por %p1353_p0, %p1352_p13 }
  0xa1   :  { %p1355_p2 = pnand %p1354_p1, %p1350_p12 }
  0xa3   :  { %1358 = shalt.err (!%p1355_p2)
}
  0xa4   :  { %227 = dma.hbm_to_vmem [thread:$0]  %s1736_s12, 2048, %s222_s2, [#allocation15], %s1491_s7, %s1491_s7, %s1492_s10  }
  0xa5   :  { %s1501_s11 = smov [#allocation17]   ;;  %s1371_s27 = sshra.s32 %s1746_s22, 4  ;;  %s1372_s27 = int_to_ptr.hbm [resolvable:$true] %s1371_s27 }
  0xa6   :  { %s238_s15 = sshll.u32 %s1501_s11, 4  ;;  %s1373_s21 = scalar_lea.hbm %s1372_s27, 128  ;;  %s239_s15 = int_to_ptr.vmem [resolvable:$true] %s238_s15 }
  0xa7   :  { %p1374_p3 = scmp.ne.s32.totalorder %s1372_s27, %s1373_s21  ;;  %s1375_s4 = scalar_lea.hbm %s1653_s30, 128 }
  0xa8   :  { %p1376_p4 = scmp.lt.s32.totalorder %s1372_s27, %s1653_s30  ;;  %p1377_p5 = scmp.lt.s32.totalorder %s1375_s4, %s1373_s21 }
  0xaa   :  { %p1378_p6 = por %p1377_p5, %p1376_p4 }
  0xac   :  { %p1379_p7 = pnand %p1378_p6, %p1374_p3 }
  0xae   :  { %1382 = shalt.err (!%p1379_p7)
}
  0xaf   :  { %244 = dma.hbm_to_vmem [thread:$0]  %s1746_s22, 2048, %s239_s15, [#allocation18], %s1491_s7, %s1491_s7, %s1492_s10  }
  0xb0   :  { %1443 = dma.done.wait [#allocation3], 2048  }
  0xb1   :  { %1444 = vsyncadd [#allocation3], 4294965248 }
  0xb2   :  { %1445 = dma.done.wait [#allocation6], 4096  }
  0xb3   :  { %1446 = vsyncadd [#allocation6], 4294963200 }
  0xb4   :  { %1447 = dma.done.wait [#allocation9], 4096  }
  0xb5   :  { %1448 = vsyncadd [#allocation9], 4294963200 }
  0xb6   :  { %1449 = dma.done.wait [#allocation12], 4096  }
  0xb7   :  { %1450 = vsyncadd [#allocation12], 4294963200 }
  0xb8   :  { %1451 = dma.done.wait [#allocation15], 4096  }
  0xb9   :  { %1452 = vsyncadd [#allocation15], 4294963200 }
  0xba   :  { %1453 = dma.done.wait [#allocation18], 2048  }
  0xbb   :  { %1454 = vsyncadd [#allocation18], 4294965248  ;;  %v303_v0 = vld [vmem:[#allocation2 + $0x78] sm:$0xff]  ;;  %v302_v1 = vld [vmem:[#allocation2 + $0x70] sm:$0xff]  ;;  %v1502_v17 = vmov 8.0   ;;  %s1828_s30 = sld [smem:[#allocation35_spill]] }
  0xbc   :  { %304 = vmatpush.msra.mxu0 %v303_v0  ;;  %v301_v2 = vld [vmem:[#allocation2 + $0x68] sm:$0xff]  ;;  %v300_v3 = vld [vmem:[#allocation2 + $0x60] sm:$0xff]  ;;  %v299_v4 = vld [vmem:[#allocation2 + $0x58] sm:$0xff]  ;;  %1135 = vrcp.f32 %v1502_v17  ;;  %s1829_s7 = sld [smem:[#allocation36_spill]]  ;;  %s1503_s6 = smov [#allocation20]  }
  0xbd   :  { %v298_v5 = vld [vmem:[#allocation2 + $0x50] sm:$0xff]  ;;  %v297_v6 = vld [vmem:[#allocation2 + $0x48] sm:$0xff]  ;;  %v296_v7 = vld [vmem:[#allocation2 + $0x40] sm:$0xff]  ;;  %s1830_s10 = sld [smem:[#allocation37_spill]]  ;;  %s1026_s0 = sshll.u32 %s1503_s6, 4  ;;  %s1027_s0 = int_to_ptr.vmem [resolvable:$true] %s1026_s0 }
  0xbe   :  { %305 = vmatpush.msra.mxu0 %v302_v1  ;;  %v295_v8 = vld [vmem:[#allocation2 + $0x38] sm:$0xff]  ;;  %v294_v9 = vld [vmem:[#allocation2 + $0x30] sm:$0xff]  ;;  %v293_v10 = vld [vmem:[#allocation2 + $0x28] sm:$0xff]  ;;  %s1831_s3 = sld [smem:[#allocation38_spill]]  ;;  %s1028_s1 = sshll.u32 %s1668_s24, 4  ;;  %s1029_s1 = int_to_ptr.hbm [resolvable:$true] %s1028_s1 }
  0xbf   :  { %v292_v11 = vld [vmem:[#allocation2 + $0x20] sm:$0xff]  ;;  %v291_v12 = vld [vmem:[#allocation2 + $0x18] sm:$0xff]  ;;  %v290_v13 = vld [vmem:[#allocation2 + $0x10] sm:$0xff]  ;;  %s1832_s18 = sld [smem:[#allocation39_spill]]  ;;  %s1407_s22 = sshra.s32 %s1029_s1, 4  ;;  %s1408_s22 = int_to_ptr.hbm [resolvable:$true] %s1407_s22 }
  0xc0   :  { %306 = vmatpush.msra.mxu0 %v301_v2  ;;  %v289_v14 = vld [vmem:[#allocation2 + $0x8] sm:$0xff]  ;;  %v288_v15 = vld [vmem:[#allocation2] sm:$0xff]  ;;  %v385_v21 = vld [vmem:[#allocation5 + $0x78] sm:$0xff]  ;;  %s1833_s23 = sld [smem:[#allocation40_spill]]  ;;  %s1409_s19 = scalar_lea.hbm %s1408_s22, 8 }
  0xc1   :  { %v287_v16 = vld [vmem:[%s1513_s5] sm:$0xff]  ;;  %386 = vmatpush.msra.mxu1 %v385_v21  ;;  %v384_v24 = vld [vmem:[#allocation5 + $0x70] sm:$0xff]  ;;  %v383_v27 = vld [vmem:[#allocation5 + $0x68] sm:$0xff]  ;;  %s1823_s5 = sld [smem:[#allocation30_spill]]  ;;  %p1410_p8 = scmp.ne.s32.totalorder %s1408_s22, %s1409_s19 }
  0xc2   :  { %307 = vmatpush.msra.mxu0 %v300_v3  ;;  %v1136_v18 = vpop.eup %1135  ;;  %v382_v28 = vld [vmem:[#allocation5 + $0x60] sm:$0xff]  ;;  %v381_v30 = vld [vmem:[#allocation5 + $0x58] sm:$0xff]  ;;  %v380_v33 = vld [vmem:[#allocation5 + $0x50] sm:$0xff]  ;;  %s1834_s16 = sld [smem:[#allocation41_spill]]  ;;  %s1411_s2 = scalar_lea.hbm %s1668_s24, 8 }
  0xc3   :  { %v333_v19 = vmul.f32 8.0, %v1136_v18  ;;  %387 = vmatpush.msra.mxu1 %v384_v24  ;;  %vm337_vm0 = vweird.f32 %v1136_v18  ;;  %v379_v35 = vld [vmem:[#allocation5 + $0x48] sm:$0xff]  ;;  %v378_v38 = vld [vmem:[#allocation5 + $0x40] sm:$0xff]  ;;  %v377_v40 = vld [vmem:[#allocation5 + $0x38] sm:$0xff]  ;;  %s1835_s26 = sld [smem:[#allocation42_spill]]  ;;  %p1412_p9 = scmp.lt.s32.totalorder %s1408_s22, %s1668_s24 }
  0xc4   :  { %308 = vmatpush.msra.mxu0 %v299_v4  ;;  %v376_v42 = vld [vmem:[#allocation5 + $0x30] sm:$0xff]  ;;  %v375_v44 = vld [vmem:[#allocation5 + $0x28] sm:$0xff]  ;;  %v374_v46 = vld [vmem:[#allocation5 + $0x20] sm:$0xff]  ;;  %s1836_s12 = sld [smem:[#allocation43_spill]]  ;;  %p1413_p10 = scmp.lt.s32.totalorder %s1411_s2, %s1409_s19 }
  0xc5   :  { %v334_v20 = vsub.f32 1.0, %v333_v19  ;;  %388 = vmatpush.msra.mxu1 %v383_v27  ;;  %v373_v48 = vld [vmem:[#allocation5 + $0x18] sm:$0xff]  ;;  %v372_v50 = vld [vmem:[#allocation5 + $0x10] sm:$0xff]  ;;  %v371_v52 = vld [vmem:[#allocation5 + $0x8] sm:$0xff] }
  0xc6   :  { %309 = vmatpush.msra.mxu0 %v298_v5  ;;  %v370_v54 = vld [vmem:[#allocation5] sm:$0xff]  ;;  %v452_v24 = vld [vmem:[#allocation7 + $0x38] sm:$0xff]  ;;  %p1414_p11 = por %p1413_p10, %p1412_p9 }
  0xc7   :  { %v335_v25 = vmul.f32 %v1136_v18, %v334_v20  ;;  %389 = vmatpush.msra.mxu1 %v382_v28  ;;  %v324_v63 = vld [vmem:[%s1523_s13] sm:$0x1]  ;;  %v454_v20 = vld [vmem:[#allocation7 + $0x48] sm:$0xff]  ;;  %s1824_s13 = sld [smem:[#allocation31_spill]] }
  0xc8   :  { %310 = vmatpush.msra.mxu0 %v297_v6  ;;  %v1125_v4 = vld [vmem:[%s1528_s17] ss:$0 sm:$0xff]  ;;  %v450_v28 = vld [vmem:[#allocation7 + $0x28] sm:$0xff]  ;;  %s1825_s17 = sld [smem:[#allocation32_spill]]  ;;  %p1415_p12 = pnand %p1414_p11, %p1410_p8 }
  0xc9   :  { %v336_v31 = vadd.f32 %v1136_v18, %v335_v25  ;;  %390 = vmatpush.msra.mxu1 %v381_v30  ;;  %v449_v30 = vld [vmem:[#allocation7 + $0x20] sm:$0xff] }
  0xca   :  { %311 = vmatpush.msra.mxu0 %v296_v7 }
  0xcb   :  { %v1763_v36 = vsel %vm337_vm0, %v1136_v18, %v336_v31  ;;  %391 = vmatpush.msra.mxu1 %v380_v33  ;;  %v455_v18 = vld [vmem:[#allocation7 + $0x50] sm:$0xff] }
  0xcc   :  { %312 = vmatpush.msra.mxu0 %v295_v8  ;;  %v460_v8 = vld [vmem:[#allocation7 + $0x78] sm:$0xff] }
  0xcd   :  { %392 = vmatpush.msra.mxu1 %v379_v35  ;;  %461 = vmatpush.msra.mxu2 %v460_v8 }
  0xce   :  { %313 = vmatpush.msra.mxu0 %v294_v9 }
  0xcf   :  { %393 = vmatpush.msra.mxu1 %v378_v38 }
  0xd0   :  { %314 = vmatpush.msra.mxu0 %v293_v10 }
  0xd1   :  { %394 = vmatpush.msra.mxu1 %v377_v40 }
  0xd2   :  { %315 = vmatpush.msra.mxu0 %v292_v11  ;;  %v459_v11 = vld [vmem:[#allocation7 + $0x70] sm:$0xff] }
  0xd3   :  { %395 = vmatpush.msra.mxu1 %v376_v42  ;;  %462 = vmatpush.msra.mxu2 %v459_v11  ;;  %v526_v11 = vld [vmem:[#allocation8 + $0x30] sm:$0xff] }
  0xd4   :  { %316 = vmatpush.msra.mxu0 %v291_v12 }
  0xd5   :  { %396 = vmatpush.msra.mxu1 %v375_v44 }
  0xd6   :  { %317 = vmatpush.msra.mxu0 %v290_v13  ;;  %v458_v13 = vld [vmem:[#allocation7 + $0x68] sm:$0xff] }
  0xd7   :  { %397 = vmatpush.msra.mxu1 %v374_v46  ;;  %463 = vmatpush.msra.mxu2 %v458_v13  ;;  %v525_v13 = vld [vmem:[#allocation8 + $0x28] sm:$0xff] }
  0xd8   :  { %318 = vmatpush.msra.mxu0 %v289_v14  ;;  %v457_v14 = vld [vmem:[#allocation7 + $0x60] sm:$0xff] }
  0xd9   :  { %398 = vmatpush.msra.mxu1 %v373_v48  ;;  %464 = vmatpush.msra.mxu2 %v457_v14  ;;  %v406_v48 = vld [vmem:[%s1538_s25] sm:$0x1]  ;;  %s1826_s25 = sld [smem:[#allocation33_spill]] }
  0xda   :  { %319 = vmatpush.msra.mxu0 %v288_v15 }
  0xdb   :  { %320 = vmatmul.f32.vlgmr.msra.gmra.mxu0 %v287_v16  ;;  %399 = vmatpush.msra.mxu1 %v372_v50  ;;  %v456_v16 = vld [vmem:[#allocation7 + $0x58] sm:$0xff] }
  0xdc   :  { %465 = vmatpush.msra.mxu2 %v456_v16 }
  0xdd   :  { %400 = vmatpush.msra.mxu1 %v371_v52 }
  0xde   :  { %466 = vmatpush.msra.mxu2 %v455_v18 }
  0xdf   :  { %401 = vmatpush.msra.mxu1 %v370_v54 }
  0xe0   :  { %467 = vmatpush.msra.mxu2 %v454_v20 }
 0x158   :  { %v321_v22 = vpop.f32.mrf.mxu0 }
 0x159   :  { %v326_v23 = vrot.slane %v321_v22, 4 }
 0x15b   :  { %v327_v26 = vadd.f32 %v326_v23, %v321_v22 }
 0x15d   :  { %v328_v29 = vrot.slane %v327_v26, 2 }
 0x15f   :  { %v329_v32 = vadd.f32 %v328_v29, %v327_v26  ;;  %v451_v26 = vld [vmem:[#allocation7 + $0x30] sm:$0xff] }
 0x161   :  { %v330_v34 = vrot.slane %v329_v32, 1 }
 0x163   :  { %v331_v37 = vadd.f32 %v330_v34, %v329_v32  ;;  %v448_v32 = vld [vmem:[#allocation7 + $0x18] sm:$0xff]  ;;  %v447_v34 = vld [vmem:[#allocation7 + $0x10] sm:$0xff] }
 0x165   :  { %v339_v39 = vmul.f32 %v1763_v36, %v331_v37  ;;  %v446_v37 = vld [vmem:[#allocation7 + $0x8] sm:$0xff] }
 0x167   :  { %v340_v41 = vsub.f32 %v321_v22, %v339_v39  ;;  %v453_v22 = vld [vmem:[#allocation7 + $0x40] sm:$0xff] }
 0x168   :  { %468 = vmatpush.msra.mxu2 %v453_v22  ;;  %v445_v39 = vld [vmem:[#allocation7] sm:$0xff] }
 0x169   :  { %v341_v43 = vmul.f32 %v340_v41, %v340_v41 }
 0x16a   :  { %469 = vmatpush.msra.mxu2 %v452_v24 }
 0x16b   :  { %v342_v45 = vrot.slane %v341_v43, 4 }
 0x16c   :  { %470 = vmatpush.msra.mxu2 %v451_v26 }
 0x16d   :  { %v343_v47 = vadd.f32 %v342_v45, %v341_v43 }
 0x16e   :  { %471 = vmatpush.msra.mxu2 %v450_v28 }
 0x16f   :  { %v344_v49 = vrot.slane %v343_v47, 2 }
 0x170   :  { %472 = vmatpush.msra.mxu2 %v449_v30 }
 0x171   :  { %v345_v51 = vadd.f32 %v344_v49, %v343_v47 }
 0x172   :  { %473 = vmatpush.msra.mxu2 %v448_v32  ;;  %v481_v32 = vld [vmem:[%s1823_s5] sm:$0x1] }
 0x173   :  { %v346_v53 = vrot.slane %v345_v51, 1 }
 0x174   :  { %474 = vmatpush.msra.mxu2 %v447_v34 }
 0x175   :  { %v347_v55 = vadd.f32 %v346_v53, %v345_v51  ;;  %v1126_v53 = vld [vmem:[%s1543_s29] ss:$0 sm:$0xff]  ;;  %s1827_s29 = sld [smem:[#allocation34_spill]] }
 0x176   :  { %475 = vmatpush.msra.mxu2 %v446_v37 }
 0x177   :  { %v348_v56 = vmul.f32 %v347_v55, %v1763_v36 }
 0x178   :  { %476 = vmatpush.msra.mxu2 %v445_v39 }
 0x179   :  { %v349_v57 = vadd.f32 1e-05, %v348_v56 }
 0x17b   :  { %1137 = vrsqrt.f32 %v349_v57  ;;  %vm356_vm2 = vweird.f32 %v349_v57 }
 0x181   :  { %v1138_v58 = vpop.eup %1137 }
 0x182   :  { %v351_v59 = vmul.f32 %v1138_v58, %v349_v57  ;;  %vm357_vm1 = vweird.f32 %v1138_v58  ;;  %v535_v57 = vld [vmem:[#allocation8 + $0x78] sm:$0xff] }
 0x183   :  { %vm358_vm3 = vmor %vm356_vm2, %vm357_vm1  ;;  %536 = vmatpush.msra.mxu3 %v535_v57 }
 0x184   :  { %v352_v60 = vmul.f32 %v1138_v58, %v351_v59 }
 0x186   :  { %v353_v61 = vmul.f32 0.5, %v352_v60  ;;  %v534_v60 = vld [vmem:[#allocation8 + $0x70] sm:$0xff] }
 0x187   :  { %537 = vmatpush.msra.mxu3 %v534_v60  ;;  %v600_v60 = vld [vmem:[#allocation10 + $0x30] sm:$0xff] }
 0x188   :  { %v354_v62 = vsub.f32 1.5, %v353_v61 }
 0x18a   :  { %v355_v0 = vmul.f32 %v1138_v58, %v354_v62  ;;  %v533_v62 = vld [vmem:[#allocation8 + $0x68] sm:$0xff] }
 0x18b   :  { %538 = vmatpush.msra.mxu3 %v533_v62  ;;  %v599_v62 = vld [vmem:[#allocation10 + $0x28] sm:$0xff] }
 0x18c   :  { %v359_v1 = vsel %vm358_vm3, %v1138_v58, %v355_v0 }
 0x18d   :  { %v360_v2 = vmul.f32 %v359_v1, %v324_v63  ;;  %v532_v63 = vld [vmem:[#allocation8 + $0x60] sm:$0xff]  ;;  %v531_v1 = vld [vmem:[#allocation8 + $0x58] sm:$0xff] }
 0x18e   :  { %539 = vmatpush.msra.mxu3 %v532_v63 }
 0x18f   :  { %v362_v3 = vperm.slane %v360_v2, 0 }
 0x190   :  { %540 = vmatpush.msra.mxu3 %v531_v1 }
 0x191   :  { %v364_v5 = vmul.f32 %v362_v3, %v340_v41  ;;  %v530_v3 = vld [vmem:[#allocation8 + $0x50] sm:$0xff] }
 0x192   :  { %541 = vmatpush.msra.mxu3 %v530_v3 }
 0x193   :  { %v368_v6 = vadd.f32 %v1125_v4, %v364_v5  ;;  %v529_v5 = vld [vmem:[#allocation8 + $0x48] sm:$0xff] }
 0x194   :  { %542 = vmatpush.msra.mxu3 %v529_v5 }
 0x195   :  { %v369_v7 = vmax.f32 %v368_v6, 0.0 }
 0x197   :  { %402 = vmatmul.f32.vlgmr.msra.gmra.mxu1 %v369_v7  ;;  %v528_v7 = vld [vmem:[#allocation8 + $0x40] sm:$0xff] }
 0x198   :  { %543 = vmatpush.msra.mxu3 %v528_v7  ;;  %v594_v7 = vld [vmem:[#allocation10] sm:$0xff] }
 0x214   :  { %v403_v9 = vpop.f32.mrf.mxu1 }
 0x215   :  { %v408_v10 = vrot.slane %v403_v9, 4 }
 0x217   :  { %v409_v12 = vadd.f32 %v408_v10, %v403_v9 }
 0x219   :  { %v410_v15 = vrot.slane %v409_v12, 2 }
 0x21b   :  { %v411_v17 = vadd.f32 %v410_v15, %v409_v12  ;;  %v524_v15 = vld [vmem:[#allocation8 + $0x20] sm:$0xff] }
 0x21d   :  { %v412_v19 = vrot.slane %v411_v17, 1 }
 0x21f   :  { %v413_v21 = vadd.f32 %v412_v19, %v411_v17  ;;  %v523_v17 = vld [vmem:[#allocation8 + $0x18] sm:$0xff]  ;;  %v522_v19 = vld [vmem:[#allocation8 + $0x10] sm:$0xff] }
 0x221   :  { %v414_v23 = vmul.f32 %v413_v21, %v1763_v36  ;;  %v521_v21 = vld [vmem:[#allocation8 + $0x8] sm:$0xff] }
 0x223   :  { %v415_v25 = vsub.f32 %v403_v9, %v414_v23  ;;  %v527_v9 = vld [vmem:[#allocation8 + $0x38] sm:$0xff]  ;;  %v520_v23 = vld [vmem:[#allocation8] sm:$0xff] }
 0x224   :  { %544 = vmatpush.msra.mxu3 %v527_v9 }
 0x225   :  { %v416_v27 = vmul.f32 %v415_v25, %v415_v25 }
 0x226   :  { %545 = vmatpush.msra.mxu3 %v526_v11 }
 0x227   :  { %v417_v29 = vrot.slane %v416_v27, 4 }
 0x228   :  { %546 = vmatpush.msra.mxu3 %v525_v13 }
 0x229   :  { %v418_v31 = vadd.f32 %v417_v29, %v416_v27 }
 0x22a   :  { %547 = vmatpush.msra.mxu3 %v524_v15 }
 0x22b   :  { %v419_v33 = vrot.slane %v418_v31, 2 }
 0x22c   :  { %548 = vmatpush.msra.mxu3 %v523_v17  ;;  %v556_v17 = vld [vmem:[%s1825_s17] sm:$0x1] }
 0x22d   :  { %v420_v35 = vadd.f32 %v419_v33, %v418_v31 }
 0x22e   :  { %549 = vmatpush.msra.mxu3 %v522_v19 }
 0x22f   :  { %v421_v38 = vrot.slane %v420_v35, 1 }
 0x230   :  { %550 = vmatpush.msra.mxu3 %v521_v21 }
 0x231   :  { %v422_v40 = vadd.f32 %v421_v38, %v420_v35  ;;  %v1127_v38 = vld [vmem:[%s1824_s13] ss:$0 sm:$0xff] }
 0x232   :  { %551 = vmatpush.msra.mxu3 %v520_v23 }
 0x233   :  { %v423_v41 = vmul.f32 %v422_v40, %v1763_v36 }
 0x235   :  { %v424_v42 = vadd.f32 1e-05, %v423_v41 }
 0x237   :  { %1139 = vrsqrt.f32 %v424_v42  ;;  %vm431_vm5 = vweird.f32 %v424_v42 }
 0x23d   :  { %v1140_v43 = vpop.eup %1139 }
 0x23e   :  { %v426_v44 = vmul.f32 %v1140_v43, %v424_v42  ;;  %vm432_vm4 = vweird.f32 %v1140_v43  ;;  %v609_v42 = vld [vmem:[#allocation10 + $0x78] sm:$0xff] }
 0x23f   :  { %vm433_vm6 = vmor %vm431_vm5, %vm432_vm4  ;;  %610 = vmatpush.msrb.mxu0 %v609_v42  ;;  %v675_v42 = vld [vmem:[#allocation11 + $0x38] sm:$0xff] }
 0x240   :  { %v427_v45 = vmul.f32 %v1140_v43, %v426_v44 }
 0x242   :  { %v428_v46 = vmul.f32 0.5, %v427_v45 }
 0x244   :  { %v429_v47 = vsub.f32 1.5, %v428_v46  ;;  %v607_v46 = vld [vmem:[#allocation10 + $0x68] sm:$0xff] }
 0x246   :  { %v430_v49 = vmul.f32 %v1140_v43, %v429_v47 }
 0x248   :  { %v434_v50 = vsel %vm433_vm6, %v1140_v43, %v430_v49  ;;  %v608_v43 = vld [vmem:[#allocation10 + $0x70] sm:$0xff] }
 0x249   :  { %v435_v51 = vmul.f32 %v434_v50, %v406_v48  ;;  %611 = vmatpush.msrb.mxu0 %v608_v43  ;;  %v606_v48 = vld [vmem:[#allocation10 + $0x60] sm:$0xff]  ;;  %v605_v50 = vld [vmem:[#allocation10 + $0x58] sm:$0xff] }
 0x24b   :  { %v437_v52 = vperm.slane %v435_v51, 0  ;;  %612 = vmatpush.msrb.mxu0 %v607_v46  ;;  %v673_v46 = vld [vmem:[#allocation11 + $0x28] sm:$0xff] }
 0x24d   :  { %v439_v54 = vmul.f32 %v437_v52, %v415_v25  ;;  %613 = vmatpush.msrb.mxu0 %v606_v48  ;;  %v604_v52 = vld [vmem:[#allocation10 + $0x50] sm:$0xff]  ;;  %v672_v48 = vld [vmem:[#allocation11 + $0x20] sm:$0xff] }
 0x24f   :  { %v443_v55 = vadd.f32 %v1126_v53, %v439_v54  ;;  %614 = vmatpush.msrb.mxu0 %v605_v50  ;;  %v603_v54 = vld [vmem:[#allocation10 + $0x48] sm:$0xff]  ;;  %v671_v50 = vld [vmem:[#allocation11 + $0x18] sm:$0xff] }
 0x251   :  { %v444_v56 = vmax.f32 %v443_v55, 0.0  ;;  %615 = vmatpush.msrb.mxu0 %v604_v52  ;;  %v670_v52 = vld [vmem:[#allocation11 + $0x10] sm:$0xff] }
 0x253   :  { %477 = vmatmul.f32.vlgmr.msra.gmra.mxu2 %v444_v56  ;;  %616 = vmatpush.msrb.mxu0 %v603_v54  ;;  %v602_v56 = vld [vmem:[#allocation10 + $0x40] sm:$0xff]  ;;  %v669_v54 = vld [vmem:[#allocation11 + $0x8] sm:$0xff] }
 0x255   :  { %617 = vmatpush.msrb.mxu0 %v602_v56 }
 0x2d6   :  { %v478_v58 = vpop.f32.mrf.mxu2 }
 0x2d7   :  { %v483_v59 = vrot.slane %v478_v58, 4 }
 0x2d9   :  { %v484_v61 = vadd.f32 %v483_v59, %v478_v58 }
 0x2db   :  { %v485_v0 = vrot.slane %v484_v61, 2 }
 0x2dd   :  { %v486_v2 = vadd.f32 %v485_v0, %v484_v61  ;;  %v598_v0 = vld [vmem:[#allocation10 + $0x20] sm:$0xff] }
 0x2df   :  { %v487_v4 = vrot.slane %v486_v2, 1 }
 0x2e1   :  { %v488_v6 = vadd.f32 %v487_v4, %v486_v2  ;;  %v597_v2 = vld [vmem:[#allocation10 + $0x18] sm:$0xff]  ;;  %v596_v4 = vld [vmem:[#allocation10 + $0x10] sm:$0xff] }
 0x2e3   :  { %v489_v8 = vmul.f32 %v488_v6, %v1763_v36  ;;  %v595_v6 = vld [vmem:[#allocation10 + $0x8] sm:$0xff] }
 0x2e5   :  { %v490_v10 = vsub.f32 %v478_v58, %v489_v8  ;;  %v601_v58 = vld [vmem:[#allocation10 + $0x38] sm:$0xff] }
 0x2e6   :  { %618 = vmatpush.msrb.mxu0 %v601_v58 }
 0x2e7   :  { %v491_v12 = vmul.f32 %v490_v10, %v490_v10 }
 0x2e8   :  { %619 = vmatpush.msrb.mxu0 %v600_v60 }
 0x2e9   :  { %v492_v14 = vrot.slane %v491_v12, 4 }
 0x2ea   :  { %620 = vmatpush.msrb.mxu0 %v599_v62 }
 0x2eb   :  { %v493_v16 = vadd.f32 %v492_v14, %v491_v12 }
 0x2ec   :  { %621 = vmatpush.msrb.mxu0 %v598_v0 }
 0x2ed   :  { %v494_v18 = vrot.slane %v493_v16, 2 }
 0x2ee   :  { %622 = vmatpush.msrb.mxu0 %v597_v2 }
 0x2ef   :  { %v495_v20 = vadd.f32 %v494_v18, %v493_v16 }
 0x2f0   :  { %623 = vmatpush.msrb.mxu0 %v596_v4 }
 0x2f1   :  { %v496_v22 = vrot.slane %v495_v20, 1 }
 0x2f2   :  { %624 = vmatpush.msrb.mxu0 %v595_v6  ;;  %v1129_v6 = vld [vmem:[%s1828_s30] ss:$0 sm:$0xff] }
 0x2f3   :  { %v497_v24 = vadd.f32 %v496_v22, %v495_v20  ;;  %v1128_v22 = vld [vmem:[%s1826_s25] ss:$0 sm:$0xff] }
 0x2f4   :  { %625 = vmatpush.msrb.mxu0 %v594_v7 }
 0x2f5   :  { %v498_v25 = vmul.f32 %v497_v24, %v1763_v36 }
 0x2f7   :  { %v499_v26 = vadd.f32 1e-05, %v498_v25  ;;  %v683_v25 = vld [vmem:[#allocation11 + $0x78] sm:$0xff] }
 0x2f8   :  { %684 = vmatpush.msrb.mxu1 %v683_v25  ;;  %v750_v25 = vld [vmem:[#allocation13 + $0x38] sm:$0xff] }
 0x2f9   :  { %1141 = vrsqrt.f32 %v499_v26  ;;  %vm506_vm8 = vweird.f32 %v499_v26 }
 0x2ff   :  { %v1142_v27 = vpop.eup %1141 }
 0x300   :  { %v501_v28 = vmul.f32 %v1142_v27, %v499_v26  ;;  %vm507_vm7 = vweird.f32 %v1142_v27  ;;  %v682_v26 = vld [vmem:[#allocation11 + $0x70] sm:$0xff] }
 0x301   :  { %vm508_vm9 = vmor %vm506_vm8, %vm507_vm7  ;;  %685 = vmatpush.msrb.mxu1 %v682_v26 }
 0x302   :  { %v502_v29 = vmul.f32 %v1142_v27, %v501_v28 }
 0x304   :  { %v503_v30 = vmul.f32 0.5, %v502_v29  ;;  %v681_v29 = vld [vmem:[#allocation11 + $0x68] sm:$0xff] }
 0x305   :  { %686 = vmatpush.msrb.mxu1 %v681_v29  ;;  %v748_v29 = vld [vmem:[#allocation13 + $0x28] sm:$0xff] }
 0x306   :  { %v504_v31 = vsub.f32 1.5, %v503_v30 }
 0x308   :  { %v505_v33 = vmul.f32 %v1142_v27, %v504_v31  ;;  %v680_v31 = vld [vmem:[#allocation11 + $0x60] sm:$0xff] }
 0x309   :  { %687 = vmatpush.msrb.mxu1 %v680_v31  ;;  %v747_v31 = vld [vmem:[#allocation13 + $0x20] sm:$0xff] }
 0x30a   :  { %v509_v34 = vsel %vm508_vm9, %v1142_v27, %v505_v33  ;;  %v679_v33 = vld [vmem:[#allocation11 + $0x58] sm:$0xff] }
 0x30b   :  { %v510_v35 = vmul.f32 %v509_v34, %v481_v32  ;;  %688 = vmatpush.msrb.mxu1 %v679_v33  ;;  %v746_v33 = vld [vmem:[#allocation13 + $0x18] sm:$0xff] }
 0x30d   :  { %v512_v37 = vperm.slane %v510_v35, 0  ;;  %v678_v35 = vld [vmem:[#allocation11 + $0x50] sm:$0xff] }
 0x30e   :  { %689 = vmatpush.msrb.mxu1 %v678_v35  ;;  %v745_v35 = vld [vmem:[#allocation13 + $0x10] sm:$0xff] }
 0x30f   :  { %v514_v39 = vmul.f32 %v512_v37, %v490_v10 }
 0x311   :  { %v518_v40 = vadd.f32 %v1127_v38, %v514_v39  ;;  %v677_v38 = vld [vmem:[#allocation11 + $0x48] sm:$0xff] }
 0x312   :  { %690 = vmatpush.msrb.mxu1 %v677_v38  ;;  %v744_v38 = vld [vmem:[#allocation13 + $0x8] sm:$0xff] }
 0x313   :  { %v519_v41 = vmax.f32 %v518_v40, 0.0  ;;  %v676_v40 = vld [vmem:[#allocation11 + $0x40] sm:$0xff] }
 0x314   :  { %691 = vmatpush.msrb.mxu1 %v676_v40 }
 0x315   :  { %552 = vmatmul.f32.vlgmr.msra.gmra.mxu3 %v519_v41 }
 0x316   :  { %692 = vmatpush.msrb.mxu1 %v675_v42 }
 0x398   :  { %v553_v44 = vpop.f32.mrf.mxu3 }
 0x399   :  { %v558_v45 = vrot.slane %v553_v44, 4 }
 0x39b   :  { %v559_v47 = vadd.f32 %v558_v45, %v553_v44 }
 0x39d   :  { %v560_v49 = vrot.slane %v559_v47, 2 }
 0x39f   :  { %v561_v51 = vadd.f32 %v560_v49, %v559_v47 }
 0x3a1   :  { %v562_v53 = vrot.slane %v561_v51, 1 }
 0x3a3   :  { %v563_v55 = vadd.f32 %v562_v53, %v561_v51 }
 0x3a5   :  { %v564_v57 = vmul.f32 %v563_v55, %v1763_v36  ;;  %v668_v55 = vld [vmem:[#allocation11] sm:$0xff] }
 0x3a7   :  { %v565_v59 = vsub.f32 %v553_v44, %v564_v57  ;;  %v674_v44 = vld [vmem:[#allocation11 + $0x30] sm:$0xff] }
 0x3a8   :  { %693 = vmatpush.msrb.mxu1 %v674_v44 }
 0x3a9   :  { %v566_v61 = vmul.f32 %v565_v59, %v565_v59 }
 0x3aa   :  { %694 = vmatpush.msrb.mxu1 %v673_v46 }
 0x3ab   :  { %v567_v63 = vrot.slane %v566_v61, 4 }
 0x3ac   :  { %695 = vmatpush.msrb.mxu1 %v672_v48 }
 0x3ad   :  { %v568_v1 = vadd.f32 %v567_v63, %v566_v61 }
 0x3ae   :  { %696 = vmatpush.msrb.mxu1 %v671_v50 }
 0x3af   :  { %v569_v3 = vrot.slane %v568_v1, 2 }
 0x3b0   :  { %697 = vmatpush.msrb.mxu1 %v670_v52 }
 0x3b1   :  { %v570_v5 = vadd.f32 %v569_v3, %v568_v1  ;;  %v630_v1 = vld [vmem:[%s1827_s29] sm:$0x1] }
 0x3b2   :  { %698 = vmatpush.msrb.mxu1 %v669_v54  ;;  %v1130_v54 = vld [vmem:[%s1830_s10] ss:$0 sm:$0xff] }
 0x3b3   :  { %v571_v8 = vrot.slane %v570_v5, 1 }
 0x3b4   :  { %699 = vmatpush.msrb.mxu1 %v668_v55 }
 0x3b5   :  { %v572_v9 = vadd.f32 %v571_v8, %v570_v5 }
 0x3b7   :  { %v573_v10 = vmul.f32 %v572_v9, %v1763_v36  ;;  %v758_v9 = vld [vmem:[#allocation13 + $0x78] sm:$0xff] }
 0x3b8   :  { %759 = vmatpush.msrb.mxu2 %v758_v9 }
 0x3b9   :  { %v574_v11 = vadd.f32 1e-05, %v573_v10  ;;  %v757_v10 = vld [vmem:[#allocation13 + $0x70] sm:$0xff] }
 0x3ba   :  { %760 = vmatpush.msrb.mxu2 %v757_v10  ;;  %v825_v10 = vld [vmem:[#allocation14 + $0x38] sm:$0xff] }
 0x3bb   :  { %1143 = vrsqrt.f32 %v574_v11  ;;  %vm581_vm11 = vweird.f32 %v574_v11 }
 0x3c1   :  { %v1144_v12 = vpop.eup %1143 }
 0x3c2   :  { %v576_v13 = vmul.f32 %v1144_v12, %v574_v11  ;;  %vm582_vm10 = vweird.f32 %v1144_v12 }
 0x3c3   :  { %vm583_vm12 = vmor %vm581_vm11, %vm582_vm10 }
 0x3c4   :  { %v577_v14 = vmul.f32 %v1144_v12, %v576_v13  ;;  %v756_v13 = vld [vmem:[#allocation13 + $0x68] sm:$0xff] }
 0x3c5   :  { %761 = vmatpush.msrb.mxu2 %v756_v13 }
 0x3c6   :  { %v578_v15 = vmul.f32 0.5, %v577_v14 }
 0x3c8   :  { %v579_v16 = vsub.f32 1.5, %v578_v15  ;;  %v755_v15 = vld [vmem:[#allocation13 + $0x60] sm:$0xff] }
 0x3c9   :  { %762 = vmatpush.msrb.mxu2 %v755_v15 }
 0x3ca   :  { %v580_v18 = vmul.f32 %v1144_v12, %v579_v16 }
 0x3cc   :  { %v584_v19 = vsel %vm583_vm12, %v1144_v12, %v580_v18 }
 0x3cd   :  { %v585_v20 = vmul.f32 %v584_v19, %v556_v17  ;;  %v754_v17 = vld [vmem:[#allocation13 + $0x58] sm:$0xff]  ;;  %v753_v19 = vld [vmem:[#allocation13 + $0x50] sm:$0xff] }
 0x3ce   :  { %763 = vmatpush.msrb.mxu2 %v754_v17 }
 0x3cf   :  { %v587_v21 = vperm.slane %v585_v20, 0 }
 0x3d0   :  { %764 = vmatpush.msrb.mxu2 %v753_v19 }
 0x3d1   :  { %v589_v23 = vmul.f32 %v587_v21, %v565_v59  ;;  %v752_v21 = vld [vmem:[#allocation13 + $0x48] sm:$0xff] }
 0x3d2   :  { %765 = vmatpush.msrb.mxu2 %v752_v21  ;;  %v819_v21 = vld [vmem:[#allocation14 + $0x8] sm:$0xff] }
 0x3d3   :  { %v593_v24 = vadd.f32 %v1128_v22, %v589_v23  ;;  %v751_v23 = vld [vmem:[#allocation13 + $0x40] sm:$0xff] }
 0x3d4   :  { %766 = vmatpush.msrb.mxu2 %v751_v23  ;;  %v818_v23 = vld [vmem:[#allocation14] sm:$0xff] }
 0x3d5   :  { %626 = vmatmul.f32.vlgmr.msrb.gmra.mxu0 %v593_v24 }
 0x3d6   :  { %767 = vmatpush.msrb.mxu2 %v750_v25 }
 0x452   :  { %v627_v27 = vpop.f32.mrf.mxu0 }
 0x453   :  { %v632_v28 = vrot.slane %v627_v27, 4 }
 0x455   :  { %v633_v30 = vadd.f32 %v632_v28, %v627_v27 }
 0x457   :  { %v634_v32 = vrot.slane %v633_v30, 2 }
 0x459   :  { %v635_v34 = vadd.f32 %v634_v32, %v633_v30 }
 0x45b   :  { %v636_v37 = vrot.slane %v635_v34, 1 }
 0x45d   :  { %v637_v39 = vadd.f32 %v636_v37, %v635_v34 }
 0x45f   :  { %v638_v41 = vmul.f32 %v637_v39, %v1763_v36  ;;  %v743_v39 = vld [vmem:[#allocation13] sm:$0xff] }
 0x461   :  { %v639_v43 = vsub.f32 %v627_v27, %v638_v41  ;;  %v749_v27 = vld [vmem:[#allocation13 + $0x30] sm:$0xff] }
 0x462   :  { %768 = vmatpush.msrb.mxu2 %v749_v27 }
 0x463   :  { %v640_v45 = vmul.f32 %v639_v43, %v639_v43 }
 0x464   :  { %769 = vmatpush.msrb.mxu2 %v748_v29 }
 0x465   :  { %v641_v47 = vrot.slane %v640_v45, 4 }
 0x466   :  { %770 = vmatpush.msrb.mxu2 %v747_v31 }
 0x467   :  { %v642_v49 = vadd.f32 %v641_v47, %v640_v45 }
 0x468   :  { %771 = vmatpush.msrb.mxu2 %v746_v33 }
 0x469   :  { %v643_v51 = vrot.slane %v642_v49, 2 }
 0x46a   :  { %772 = vmatpush.msrb.mxu2 %v745_v35 }
 0x46b   :  { %v644_v53 = vadd.f32 %v643_v51, %v642_v49  ;;  %v704_v49 = vld [vmem:[%s1829_s7] sm:$0x1] }
 0x46c   :  { %773 = vmatpush.msrb.mxu2 %v744_v38  ;;  %v1131_v38 = vld [vmem:[%s1832_s18] ss:$0 sm:$0xff] }
 0x46d   :  { %v645_v56 = vrot.slane %v644_v53, 1 }
 0x46e   :  { %774 = vmatpush.msrb.mxu2 %v743_v39 }
 0x46f   :  { %v646_v57 = vadd.f32 %v645_v56, %v644_v53 }
 0x471   :  { %v647_v58 = vmul.f32 %v646_v57, %v1763_v36  ;;  %v833_v57 = vld [vmem:[#allocation14 + $0x78] sm:$0xff] }
 0x472   :  { %834 = vmatpush.msrb.mxu3 %v833_v57  ;;  %v901_v57 = vld [vmem:[#allocation16 + $0x40] sm:$0xff] }
 0x473   :  { %v648_v59 = vadd.f32 1e-05, %v647_v58 }
 0x475   :  { %1145 = vrsqrt.f32 %v648_v59  ;;  %vm655_vm14 = vweird.f32 %v648_v59 }
 0x47b   :  { %v1146_v60 = vpop.eup %1145 }
 0x47c   :  { %v650_v61 = vmul.f32 %v1146_v60, %v648_v59  ;;  %vm656_vm13 = vweird.f32 %v1146_v60 }
 0x47d   :  { %vm657_vm15 = vmor %vm655_vm14, %vm656_vm13 }
 0x47e   :  { %v651_v62 = vmul.f32 %v1146_v60, %v650_v61 }
 0x480   :  { %v652_v63 = vmul.f32 0.5, %v651_v62  ;;  %v831_v62 = vld [vmem:[#allocation14 + $0x68] sm:$0xff] }
 0x482   :  { %v653_v0 = vsub.f32 1.5, %v652_v63 }
 0x484   :  { %v654_v2 = vmul.f32 %v1146_v60, %v653_v0  ;;  %v830_v0 = vld [vmem:[#allocation14 + $0x60] sm:$0xff] }
 0x486   :  { %v658_v3 = vsel %vm657_vm15, %v1146_v60, %v654_v2  ;;  %v832_v60 = vld [vmem:[#allocation14 + $0x70] sm:$0xff]  ;;  %v829_v2 = vld [vmem:[#allocation14 + $0x58] sm:$0xff] }
 0x487   :  { %v659_v4 = vmul.f32 %v658_v3, %v630_v1  ;;  %835 = vmatpush.msrb.mxu3 %v832_v60 }
 0x489   :  { %v661_v5 = vperm.slane %v659_v4, 0  ;;  %836 = vmatpush.msrb.mxu3 %v831_v62  ;;  %v828_v4 = vld [vmem:[#allocation14 + $0x50] sm:$0xff] }
 0x48b   :  { %v663_v7 = vmul.f32 %v661_v5, %v639_v43  ;;  %837 = vmatpush.msrb.mxu3 %v830_v0 }
 0x48d   :  { %v667_v8 = vadd.f32 %v1129_v6, %v663_v7  ;;  %838 = vmatpush.msrb.mxu3 %v829_v2  ;;  %v827_v6 = vld [vmem:[#allocation14 + $0x48] sm:$0xff] }
 0x48f   :  { %700 = vmatmul.f32.vlgmr.msrb.gmra.mxu1 %v667_v8  ;;  %839 = vmatpush.msrb.mxu3 %v828_v4  ;;  %v826_v8 = vld [vmem:[#allocation14 + $0x40] sm:$0xff] }
 0x491   :  { %840 = vmatpush.msrb.mxu3 %v827_v6 }
 0x493   :  { %841 = vmatpush.msrb.mxu3 %v826_v8 }
 0x495   :  { %842 = vmatpush.msrb.mxu3 %v825_v10 }
 0x50c   :  { %v701_v11 = vpop.f32.mrf.mxu1 }
 0x50d   :  { %v706_v12 = vrot.slane %v701_v11, 4 }
 0x50f   :  { %v707_v14 = vadd.f32 %v706_v12, %v701_v11  ;;  %v824_v12 = vld [vmem:[#allocation14 + $0x30] sm:$0xff] }
 0x510   :  { %843 = vmatpush.msrb.mxu3 %v824_v12 }
 0x511   :  { %v708_v16 = vrot.slane %v707_v14, 2 }
 0x513   :  { %v709_v18 = vadd.f32 %v708_v16, %v707_v14  ;;  %v823_v14 = vld [vmem:[#allocation14 + $0x28] sm:$0xff]  ;;  %v822_v16 = vld [vmem:[#allocation14 + $0x20] sm:$0xff] }
 0x514   :  { %844 = vmatpush.msrb.mxu3 %v823_v14 }
 0x515   :  { %v710_v20 = vrot.slane %v709_v18, 1 }
 0x516   :  { %845 = vmatpush.msrb.mxu3 %v822_v16 }
 0x517   :  { %v711_v22 = vadd.f32 %v710_v20, %v709_v18  ;;  %v821_v18 = vld [vmem:[#allocation14 + $0x18] sm:$0xff]  ;;  %v820_v20 = vld [vmem:[#allocation14 + $0x10] sm:$0xff] }
 0x518   :  { %846 = vmatpush.msrb.mxu3 %v821_v18 }
 0x519   :  { %v712_v24 = vmul.f32 %v711_v22, %v1763_v36 }
 0x51a   :  { %847 = vmatpush.msrb.mxu3 %v820_v20 }
 0x51b   :  { %v713_v26 = vsub.f32 %v701_v11, %v712_v24 }
 0x51c   :  { %848 = vmatpush.msrb.mxu3 %v819_v21 }
 0x51d   :  { %v714_v28 = vmul.f32 %v713_v26, %v713_v26 }
 0x51e   :  { %849 = vmatpush.msrb.mxu3 %v818_v23 }
 0x51f   :  { %v715_v30 = vrot.slane %v714_v28, 4 }
 0x521   :  { %v716_v32 = vadd.f32 %v715_v30, %v714_v28 }
 0x523   :  { %v717_v34 = vrot.slane %v716_v32, 2 }
 0x525   :  { %v718_v37 = vadd.f32 %v717_v34, %v716_v32  ;;  %v779_v32 = vld [vmem:[%s1831_s3] sm:$0x1] }
 0x527   :  { %v719_v40 = vrot.slane %v718_v37, 1 }
 0x529   :  { %v720_v41 = vadd.f32 %v719_v40, %v718_v37 }
 0x52b   :  { %v721_v42 = vmul.f32 %v720_v41, %v1763_v36 }
 0x52d   :  { %v722_v43 = vadd.f32 1e-05, %v721_v42  ;;  %v908_v42 = vld [vmem:[#allocation16 + $0x78] sm:$0xff] }
 0x52e   :  { %909 = vmatpush.msra.mxu0 %v908_v42  ;;  %v976_v42 = vld [vmem:[#allocation17 + $0x40] sm:$0xff] }
 0x52f   :  { %1147 = vrsqrt.f32 %v722_v43  ;;  %vm729_vm1 = vweird.f32 %v722_v43 }
 0x535   :  { %v1148_v44 = vpop.eup %1147 }
 0x536   :  { %v724_v45 = vmul.f32 %v1148_v44, %v722_v43  ;;  %vm730_vm0 = vweird.f32 %v1148_v44 }
 0x537   :  { %vm731_vm2 = vmor %vm729_vm1, %vm730_vm0 }
 0x538   :  { %v725_v46 = vmul.f32 %v1148_v44, %v724_v45  ;;  %v907_v45 = vld [vmem:[#allocation16 + $0x70] sm:$0xff] }
 0x539   :  { %910 = vmatpush.msra.mxu0 %v907_v45 }
 0x53a   :  { %v726_v47 = vmul.f32 0.5, %v725_v46 }
 0x53c   :  { %v727_v48 = vsub.f32 1.5, %v726_v47  ;;  %v906_v47 = vld [vmem:[#allocation16 + $0x68] sm:$0xff] }
 0x53d   :  { %911 = vmatpush.msra.mxu0 %v906_v47 }
 0x53e   :  { %v728_v50 = vmul.f32 %v1148_v44, %v727_v48 }
 0x540   :  { %v732_v51 = vsel %vm731_vm2, %v1148_v44, %v728_v50 }
 0x541   :  { %v733_v52 = vmul.f32 %v732_v51, %v704_v49  ;;  %v905_v49 = vld [vmem:[#allocation16 + $0x60] sm:$0xff]  ;;  %v904_v51 = vld [vmem:[#allocation16 + $0x58] sm:$0xff] }
 0x542   :  { %912 = vmatpush.msra.mxu0 %v905_v49 }
 0x543   :  { %v735_v53 = vperm.slane %v733_v52, 0 }
 0x544   :  { %913 = vmatpush.msra.mxu0 %v904_v51 }
 0x545   :  { %v737_v55 = vmul.f32 %v735_v53, %v713_v26  ;;  %v903_v53 = vld [vmem:[#allocation16 + $0x50] sm:$0xff] }
 0x546   :  { %914 = vmatpush.msra.mxu0 %v903_v53 }
 0x547   :  { %v741_v56 = vadd.f32 %v1130_v54, %v737_v55  ;;  %v902_v55 = vld [vmem:[#allocation16 + $0x48] sm:$0xff] }
 0x548   :  { %915 = vmatpush.msra.mxu0 %v902_v55 }
 0x549   :  { %775 = vmatmul.f32.vlgmr.msrb.gmra.mxu2 %v741_v56  ;;  %742 = vst [vmem:[#allocation20] sm:$0xff] %v741_v56 }
 0x54a   :  { %916 = vmatpush.msra.mxu0 %v901_v57 }
 0x5cc   :  { %v776_v58 = vpop.f32.mrf.mxu2 }
 0x5cd   :  { %v781_v59 = vrot.slane %v776_v58, 4 }
 0x5cf   :  { %v782_v61 = vadd.f32 %v781_v59, %v776_v58  ;;  %v900_v59 = vld [vmem:[#allocation16 + $0x38] sm:$0xff] }
 0x5d0   :  { %917 = vmatpush.msra.mxu0 %v900_v59 }
 0x5d1   :  { %v783_v63 = vrot.slane %v782_v61, 2 }
 0x5d3   :  { %v784_v1 = vadd.f32 %v783_v63, %v782_v61  ;;  %v899_v61 = vld [vmem:[#allocation16 + $0x30] sm:$0xff]  ;;  %v898_v63 = vld [vmem:[#allocation16 + $0x28] sm:$0xff] }
 0x5d4   :  { %918 = vmatpush.msra.mxu0 %v899_v61 }
 0x5d5   :  { %v785_v3 = vrot.slane %v784_v1, 1 }
 0x5d6   :  { %919 = vmatpush.msra.mxu0 %v898_v63 }
 0x5d7   :  { %v786_v5 = vadd.f32 %v785_v3, %v784_v1  ;;  %v897_v1 = vld [vmem:[#allocation16 + $0x20] sm:$0xff]  ;;  %v896_v3 = vld [vmem:[#allocation16 + $0x18] sm:$0xff] }
 0x5d8   :  { %920 = vmatpush.msra.mxu0 %v897_v1 }
 0x5d9   :  { %v787_v7 = vmul.f32 %v786_v5, %v1763_v36  ;;  %v895_v5 = vld [vmem:[#allocation16 + $0x10] sm:$0xff] }
 0x5da   :  { %921 = vmatpush.msra.mxu0 %v896_v3 }
 0x5db   :  { %v788_v9 = vsub.f32 %v776_v58, %v787_v7  ;;  %v894_v7 = vld [vmem:[#allocation16 + $0x8] sm:$0xff] }
 0x5dc   :  { %922 = vmatpush.msra.mxu0 %v895_v5 }
 0x5dd   :  { %v789_v11 = vmul.f32 %v788_v9, %v788_v9 }
 0x5de   :  { %923 = vmatpush.msra.mxu0 %v894_v7 }
 0x5df   :  { %v790_v13 = vrot.slane %v789_v11, 4 }
 0x5e1   :  { %v791_v15 = vadd.f32 %v790_v13, %v789_v11 }
 0x5e3   :  { %v792_v17 = vrot.slane %v791_v15, 2 }
 0x5e5   :  { %v793_v19 = vadd.f32 %v792_v17, %v791_v15  ;;  %v854_v17 = vld [vmem:[%s1833_s23] sm:$0x1] }
 0x5e7   :  { %v794_v22 = vrot.slane %v793_v19, 1 }
 0x5e9   :  { %v795_v24 = vadd.f32 %v794_v22, %v793_v19  ;;  %v1132_v22 = vld [vmem:[%s1834_s16] ss:$0 sm:$0xff] }
 0x5eb   :  { %v796_v25 = vmul.f32 %v795_v24, %v1763_v36 }
 0x5ed   :  { %v797_v26 = vadd.f32 1e-05, %v796_v25 }
 0x5ef   :  { %1149 = vrsqrt.f32 %v797_v26  ;;  %vm804_vm4 = vweird.f32 %v797_v26 }
 0x5f5   :  { %v1150_v27 = vpop.eup %1149 }
 0x5f6   :  { %v799_v28 = vmul.f32 %v1150_v27, %v797_v26  ;;  %vm805_vm3 = vweird.f32 %v1150_v27  ;;  %v983_v26 = vld [vmem:[#allocation17 + $0x78] sm:$0xff] }
 0x5f7   :  { %vm806_vm5 = vmor %vm804_vm4, %vm805_vm3  ;;  %988 = vmatpush.msra.mxu1 %v983_v26 }
 0x5f8   :  { %v800_v29 = vmul.f32 %v1150_v27, %v799_v28 }
 0x5fa   :  { %v801_v30 = vmul.f32 0.5, %v800_v29  ;;  %v982_v29 = vld [vmem:[#allocation17 + $0x70] sm:$0xff] }
 0x5fb   :  { %989 = vmatpush.msra.mxu1 %v982_v29 }
 0x5fc   :  { %v802_v31 = vsub.f32 1.5, %v801_v30 }
 0x5fe   :  { %v803_v33 = vmul.f32 %v1150_v27, %v802_v31  ;;  %v981_v31 = vld [vmem:[#allocation17 + $0x68] sm:$0xff] }
 0x5ff   :  { %990 = vmatpush.msra.mxu1 %v981_v31 }
 0x600   :  { %v807_v34 = vsel %vm806_vm5, %v1150_v27, %v803_v33  ;;  %v980_v33 = vld [vmem:[#allocation17 + $0x60] sm:$0xff] }
 0x601   :  { %v808_v35 = vmul.f32 %v807_v34, %v779_v32  ;;  %991 = vmatpush.msra.mxu1 %v980_v33 }
 0x603   :  { %v810_v37 = vperm.slane %v808_v35, 0  ;;  %v979_v35 = vld [vmem:[#allocation17 + $0x58] sm:$0xff] }
 0x604   :  { %992 = vmatpush.msra.mxu1 %v979_v35 }
 0x605   :  { %v812_v39 = vmul.f32 %v810_v37, %v788_v9  ;;  %v893_v9 = vld [vmem:[#allocation16] sm:$0xff] }
 0x606   :  { %924 = vmatpush.msra.mxu0 %v893_v9 }
 0x607   :  { %v816_v40 = vadd.f32 %v1131_v38, %v812_v39  ;;  %v978_v38 = vld [vmem:[#allocation17 + $0x50] sm:$0xff] }
 0x608   :  { %993 = vmatpush.msra.mxu1 %v978_v38 }
 0x609   :  { %v817_v41 = vmax.f32 %v816_v40, 0.0  ;;  %v977_v40 = vld [vmem:[#allocation17 + $0x48] sm:$0xff] }
 0x60a   :  { %994 = vmatpush.msra.mxu1 %v977_v40 }
 0x60b   :  { %850 = vmatmul.f32.vlgmr.msrb.gmra.mxu3 %v817_v41 }
 0x60c   :  { %995 = vmatpush.msra.mxu1 %v976_v42 }
 0x68e   :  { %v851_v43 = vpop.f32.mrf.mxu3 }
 0x68f   :  { %v856_v44 = vrot.slane %v851_v43, 4 }
 0x691   :  { %v857_v46 = vadd.f32 %v856_v44, %v851_v43  ;;  %v975_v44 = vld [vmem:[#allocation17 + $0x38] sm:$0xff] }
 0x692   :  { %996 = vmatpush.msra.mxu1 %v975_v44 }
 0x693   :  { %v858_v48 = vrot.slane %v857_v46, 2 }
 0x695   :  { %v859_v50 = vadd.f32 %v858_v48, %v857_v46  ;;  %v974_v46 = vld [vmem:[#allocation17 + $0x30] sm:$0xff]  ;;  %v973_v48 = vld [vmem:[#allocation17 + $0x28] sm:$0xff] }
 0x696   :  { %997 = vmatpush.msra.mxu1 %v974_v46 }
 0x697   :  { %v860_v52 = vrot.slane %v859_v50, 1 }
 0x698   :  { %998 = vmatpush.msra.mxu1 %v973_v48 }
 0x699   :  { %v861_v54 = vadd.f32 %v860_v52, %v859_v50  ;;  %v972_v50 = vld [vmem:[#allocation17 + $0x20] sm:$0xff]  ;;  %v971_v52 = vld [vmem:[#allocation17 + $0x18] sm:$0xff] }
 0x69a   :  { %999 = vmatpush.msra.mxu1 %v972_v50 }
 0x69b   :  { %v862_v56 = vmul.f32 %v861_v54, %v1763_v36  ;;  %v970_v54 = vld [vmem:[#allocation17 + $0x10] sm:$0xff] }
 0x69c   :  { %1000 = vmatpush.msra.mxu1 %v971_v52 }
 0x69d   :  { %v863_v58 = vsub.f32 %v851_v43, %v862_v56  ;;  %v969_v56 = vld [vmem:[#allocation17 + $0x8] sm:$0xff] }
 0x69e   :  { %1001 = vmatpush.msra.mxu1 %v970_v54 }
 0x69f   :  { %v864_v60 = vmul.f32 %v863_v58, %v863_v58 }
 0x6a0   :  { %1002 = vmatpush.msra.mxu1 %v969_v56 }
 0x6a1   :  { %v865_v62 = vrot.slane %v864_v60, 4 }
 0x6a3   :  { %v866_v0 = vadd.f32 %v865_v62, %v864_v60 }
 0x6a5   :  { %v867_v2 = vrot.slane %v866_v0, 2 }
 0x6a7   :  { %v868_v4 = vadd.f32 %v867_v2, %v866_v0  ;;  %v929_v2 = vld [vmem:[%s1835_s26] sm:$0x1] }
 0x6a9   :  { %v869_v6 = vrot.slane %v868_v4, 1 }
 0x6ab   :  { %v870_v8 = vadd.f32 %v869_v6, %v868_v4 }
 0x6ad   :  { %v871_v10 = vmul.f32 %v870_v8, %v1763_v36 }
 0x6af   :  { %v872_v11 = vadd.f32 1e-05, %v871_v10 }
 0x6b1   :  { %1151 = vrsqrt.f32 %v872_v11  ;;  %vm879_vm7 = vweird.f32 %v872_v11 }
 0x6b7   :  { %v1152_v12 = vpop.eup %1151 }
 0x6b8   :  { %v874_v13 = vmul.f32 %v1152_v12, %v872_v11  ;;  %vm880_vm6 = vweird.f32 %v1152_v12 }
 0x6b9   :  { %vm881_vm8 = vmor %vm879_vm7, %vm880_vm6 }
 0x6ba   :  { %v875_v14 = vmul.f32 %v1152_v12, %v874_v13 }
 0x6bc   :  { %v876_v15 = vmul.f32 0.5, %v875_v14 }
 0x6be   :  { %v877_v16 = vsub.f32 1.5, %v876_v15 }
 0x6c0   :  { %v878_v18 = vmul.f32 %v1152_v12, %v877_v16 }
 0x6c2   :  { %v882_v19 = vsel %vm881_vm8, %v1152_v12, %v878_v18 }
 0x6c3   :  { %v883_v20 = vmul.f32 %v882_v19, %v854_v17 }
 0x6c5   :  { %v885_v21 = vperm.slane %v883_v20, 0 }
 0x6c7   :  { %v887_v23 = vmul.f32 %v885_v21, %v863_v58  ;;  %v968_v58 = vld [vmem:[#allocation17] sm:$0xff] }
 0x6c8   :  { %1003 = vmatpush.msra.mxu1 %v968_v58 }
 0x6c9   :  { %v891_v24 = vadd.f32 %v1132_v22, %v887_v23 }
 0x6cb   :  { %v892_v25 = vmax.f32 %v891_v24, 0.0 }
 0x6cd   :  { %925 = vmatmul.f32.vlgmr.msra.gmra.mxu0 %v892_v25 }
 0x74a   :  { %v926_v27 = vpop.f32.mrf.mxu0 }
 0x74b   :  { %v931_v28 = vrot.slane %v926_v27, 4 }
 0x74d   :  { %v932_v30 = vadd.f32 %v931_v28, %v926_v27 }
 0x74f   :  { %v933_v32 = vrot.slane %v932_v30, 2 }
 0x751   :  { %v934_v34 = vadd.f32 %v933_v32, %v932_v30 }
 0x753   :  { %v935_v37 = vrot.slane %v934_v34, 1 }
 0x755   :  { %v936_v39 = vadd.f32 %v935_v37, %v934_v34 }
 0x757   :  { %v937_v41 = vmul.f32 %v936_v39, %v1763_v36 }
 0x759   :  { %v938_v43 = vsub.f32 %v926_v27, %v937_v41 }
 0x75b   :  { %v939_v45 = vmul.f32 %v938_v43, %v938_v43 }
 0x75d   :  { %v940_v47 = vrot.slane %v939_v45, 4 }
 0x75f   :  { %v941_v49 = vadd.f32 %v940_v47, %v939_v45 }
 0x761   :  { %v942_v51 = vrot.slane %v941_v49, 2 }
 0x763   :  { %v943_v53 = vadd.f32 %v942_v51, %v941_v49 }
 0x765   :  { %v944_v55 = vrot.slane %v943_v53, 1 }
 0x767   :  { %v945_v57 = vadd.f32 %v944_v55, %v943_v53 }
 0x769   :  { %v946_v59 = vmul.f32 %v945_v57, %v1763_v36  ;;  %v1133_v36 = vld [vmem:[%s1836_s12] ss:$0 sm:$0xff] }
 0x76b   :  { %v947_v60 = vadd.f32 1e-05, %v946_v59 }
 0x76d   :  { %1153 = vrsqrt.f32 %v947_v60  ;;  %vm954_vm10 = vweird.f32 %v947_v60 }
 0x773   :  { %v1154_v61 = vpop.eup %1153 }
 0x774   :  { %v949_v62 = vmul.f32 %v1154_v61, %v947_v60  ;;  %vm955_vm9 = vweird.f32 %v1154_v61 }
 0x775   :  { %vm956_vm11 = vmor %vm954_vm10, %vm955_vm9 }
 0x776   :  { %v950_v63 = vmul.f32 %v1154_v61, %v949_v62 }
 0x778   :  { %v951_v0 = vmul.f32 0.5, %v950_v63 }
 0x77a   :  { %v952_v1 = vsub.f32 1.5, %v951_v0 }
 0x77c   :  { %v953_v3 = vmul.f32 %v1154_v61, %v952_v1 }
 0x77e   :  { %v957_v4 = vsel %vm956_vm11, %v1154_v61, %v953_v3 }
 0x77f   :  { %v958_v5 = vmul.f32 %v957_v4, %v929_v2 }
 0x781   :  { %v960_v6 = vperm.slane %v958_v5, 0 }
 0x783   :  { %v962_v7 = vmul.f32 %v960_v6, %v938_v43 }
 0x785   :  { %v966_v8 = vadd.f32 %v1133_v36, %v962_v7 }
 0x787   :  { %v967_v9 = vmax.f32 %v966_v8, 0.0 }
 0x789   :  { %1004 = vmatmul.f32.vlgmr.msra.gmra.mxu1 %v967_v9 }
 0x78a   :  { %1418 = shalt.err (!%p1415_p12)
}
 0x78b   :  { %1031 = dma.vmem_to_hbm [thread:$0]  %s1027_s0, 128, %s1029_s1, [#allocation21]   ;;  %v1134_v10 = vld [vmem:[%s1658_s8] ss:$0 sm:$0xff] }
 0x78c   :  { %s1504_s20 = smov [#allocation19]   ;;  %s1017_s28 = sshll.u32 %s1663_s14, 4  ;;  %s1018_s28 = int_to_ptr.hbm [resolvable:$true] %s1017_s28 }
 0x78d   :  { %s1015_s9 = sshll.u32 %s1504_s20, 4  ;;  %s1431_s24 = sshra.s32 %s1018_s28, 4  ;;  %s1016_s9 = int_to_ptr.vmem [resolvable:$true] %s1015_s9  ;;  %s1432_s24 = int_to_ptr.hbm [resolvable:$true] %s1431_s24 }
 0x78e   :  { %s1433_s11 = scalar_lea.hbm %s1432_s24, 8  ;;  %s1435_s15 = scalar_lea.hbm %s1663_s14, 8 }
 0x78f   :  { %p1434_p13 = scmp.ne.s32.totalorder %s1432_s24, %s1433_s11  ;;  %p1436_p0 = scmp.lt.s32.totalorder %s1432_s24, %s1663_s14 }
 0x790   :  { %p1437_p1 = scmp.lt.s32.totalorder %s1435_s15, %s1433_s11 }
 0x792   :  { %p1438_p2 = por %p1437_p1, %p1436_p0 }
 0x794   :  { %p1439_p3 = pnand %p1438_p2, %p1434_p13 }
 0x806   :  { %v1005_v11 = vpop.f32.mrf.mxu1 }
 0x807   :  { %v1006_v12 = vadd.f32 %v1134_v10, %v1005_v11 }
 0x809   :  { %v1008_v13 = vmax.f32 %v1006_v12, 0.0 }
 0x80b   :  { %1009 = vst [vmem:[#allocation19] sm:$0xff] %v1008_v13 }
 0x80c   :  { %1442 = shalt.err (!%p1439_p3)
}
 0x80d   :  { %1020 = dma.vmem_to_hbm [thread:$0]  %s1016_s9, 128, %s1018_s28, [#allocation4]  }
 0x80e   :  { %1455 = dma.done.wait [#allocation4], 128  }
 0x80f   :  { %1456 = vsyncadd [#allocation4], 4294967168 }
 0x810   :  { %1457 = dma.done.wait [#allocation21], 128  }
 0x811   :  { %1458 = vsyncadd [#allocation21], 4294967168 }
 0x812   :  { %1040 = vsyncpa [#allocation3], 1 }
 0x813   :  { %1041 = vsyncpa [#allocation6], 1 }
 0x814   :  { %1042 = vsyncpa [#allocation9], 1 }
 0x815   :  { %1043 = vsyncpa [#allocation12], 1 }
 0x816   :  { %1044 = vsyncpa [#allocation15], 1 }
 0x817   :  { %1045 = vsyncpa [#allocation18], 1 }
 0x818   :  { %1046 = vsyncpa [#allocation4], 1 }
 0x819   :  { %1047 = vsyncpa [#allocation21], 1 }

</bundles_post_ra>
